<compile_context>
chip_gen: v6e
topology: v6e:2x2x1
jax: 0.10.0
libtpu: 0.0.40
codegen_flags: <defaults>
</compile_context>

<pallas_src>
import jax
import jax.numpy as jnp
from jax import lax
from jax.experimental import pallas as pl
from jax.experimental.pallas import tpu as pltpu


# -----------------------------------------------------------------------------
# Pallas kernel: one stacked-LSTM layer, BOTH directions fused, whole sequence.
# -----------------------------------------------------------------------------
def _bilstm_layer_kernel(gx_ref, wh_ref, h0_ref, c0_ref, out_ref):
    """Fused fwd+bwd LSTM recurrence over the full sequence.

    gx_ref : (T, B, 8H)  precomputed x-projection + bias.  Columns are laid out
             [i_f i_b | f_f f_b | o_f o_b | g_f g_b]; the *_b columns were built
             from the time-reversed input, so row s already holds the backward
             pre-activations for input time T-1-s.
    wh_ref : (2H, 8H)    block-diagonal recurrent weights (fwd rows 0:H, bwd H:2H).
    h0/c0  : (B, 2H)     [h_fwd | h_bwd] initial states.
    out    : (T, B, 2H)  [fwd | bwd] hidden outputs in natural time order.
    """
    T = gx_ref.shape[0]
    H2 = out_ref.shape[-1]          # 2H
    H = H2 // 2
    wh = wh_ref[...]                # hoisted out of the recurrence loop

    def step(s, carry):
        h, c = carry                # (B, 2H) each, [fwd | bwd]
        gates = gx_ref[s] + jnp.dot(h, wh, preferred_element_type=jnp.float32)
        # sigmoid gates (i, f, o) form one contiguous 6H-lane slab; tanh gets 2H.
        sig = jax.nn.sigmoid(gates[:, :3 * H2])
        g = jnp.tanh(gates[:, 3 * H2:])
        i = sig[:, :H2]
        f = sig[:, H2:2 * H2]
        o = sig[:, 2 * H2:3 * H2]
        c_new = f * c + i * g
        h_new = o * jnp.tanh(c_new)
        # fwd half belongs to output time s, bwd half to output time T-1-s.
        out_ref[s, :, 0:H] = h_new[:, 0:H]
        out_ref[T - 1 - s, :, H:H2] = h_new[:, H:H2]
        return h_new, c_new

    lax.fori_loop(0, T, step, (h0_ref[...], c0_ref[...]), unroll=True)


def bilstm_layer(gx_tm, wh_fused, h0_cat, c0_cat):
    """Run one fused bidirectional layer.  gx_tm: (T,B,8H) -> (T,B,2H)."""
    T, B, G = gx_tm.shape
    H2 = wh_fused.shape[0]          # 2H
    return pl.pallas_call(
        _bilstm_layer_kernel,
        out_shape=jax.ShapeDtypeStruct((T, B, H2), jnp.float32),
        grid=(1,),
        in_specs=[
            pl.BlockSpec((T, B, G), lambda i: (0, 0, 0)),   # gx (full block)
            pl.BlockSpec((H2, G), lambda i: (0, 0)),        # Wh block-diag
            pl.BlockSpec((B, H2), lambda i: (0, 0)),        # h0 [fwd|bwd]
            pl.BlockSpec((B, H2), lambda i: (0, 0)),        # c0 [fwd|bwd]
        ],
        out_specs=pl.BlockSpec((T, B, H2), lambda i: (0, 0, 0)),
        compiler_params=pltpu.CompilerParams(
            dimension_semantics=("arbitrary",)),
    )(gx_tm, wh_fused, h0_cat, c0_cat)


# -----------------------------------------------------------------------------
# Parameter construction + fusion (deterministic, synthetic)
# -----------------------------------------------------------------------------
def make_lstm_params(key, nlayers, input_size, hidden_size):
    """Raw per-direction params in PyTorch layout: wx (D,4H), wh (H,4H), b (4H,)."""
    params = []
    for layer in range(nlayers):
        d_in = input_size if layer == 0 else 2 * hidden_size
        layer_p = {}
        for dname in ('fwd', 'bwd'):
            key, k1, k2, k3 = jax.random.split(key, 4)
            scale = 1.0 / jnp.sqrt(hidden_size)
            wx = jax.random.uniform(k1, (d_in, 4 * hidden_size),
                                    jnp.float32, -scale, scale)
            wh = jax.random.uniform(k2, (hidden_size, 4 * hidden_size),
                                    jnp.float32, -scale, scale)
            b = jax.random.uniform(k3, (4 * hidden_size,),
                                   jnp.float32, -scale, scale)
            layer_p[dname] = (wx, wh, b)
        params.append(layer_p)
    return params, key


def _reorder_ifog(w, H):
    """PyTorch gate order [i,f,g,o] -> [i,f,o,g] along the last axis (width 4H)."""
    return jnp.concatenate(
        [w[..., 0:2 * H], w[..., 3 * H:4 * H], w[..., 2 * H:3 * H]], axis=-1)


def _interleave(a, b, H):
    """a, b: (..., 4H) -> (..., 8H) with per-gate [a_block | b_block] interleave."""
    sh = a.shape[:-1]
    a4 = a.reshape(sh + (4, H))
    b4 = b.reshape(sh + (4, H))
    return jnp.stack([a4, b4], axis=-2).reshape(sh + (8 * H,))


def fuse_bilstm_params(raw_layer_params, hidden_size):
    """Build the fused/interleaved weights the Pallas kernel consumes."""
    H = hidden_size
    fused = []
    for p in raw_layer_params:
        wx_f, wh_f, b_f = p['fwd']
        wx_b, wh_b, b_b = p['bwd']
        wx_f_r, wx_b_r = _reorder_ifog(wx_f, H), _reorder_ifog(wx_b, H)
        wh_f_r, wh_b_r = _reorder_ifog(wh_f, H), _reorder_ifog(wh_b, H)
        b_f_r, b_b_r = _reorder_ifog(b_f, H), _reorder_ifog(b_b, H)

        wxf = _interleave(wx_f_r, jnp.zeros_like(wx_f_r), H)   # (D, 8H) fwd cols
        wxb = _interleave(jnp.zeros_like(wx_b_r), wx_b_r, H)   # (D, 8H) bwd cols
        wh_top = _interleave(wh_f_r, jnp.zeros_like(wh_f_r), H)  # (H, 8H)
        wh_bot = _interleave(jnp.zeros_like(wh_b_r), wh_b_r, H)  # (H, 8H)
        wh = jnp.concatenate([wh_top, wh_bot], axis=0)           # (2H, 8H)
        b = _interleave(b_f_r, b_b_r, H)                         # (8H,)
        fused.append({'wxf': wxf, 'wxb': wxb, 'wh': wh, 'b': b})
    return fused


# -----------------------------------------------------------------------------
# Bidirectional stacked LSTM forward (batch_first I/O, like nn.LSTM(...)[0])
# -----------------------------------------------------------------------------
def bilstm_forward(x_bf, hidden, fused_layer_params):
    """x_bf: (B, T, D); hidden = (h0, c0), each (nlayers*2, B, H) -> (B, T, 2H)."""
    h0_all, c0_all = hidden
    cur = x_bf
    time_major = False
    hp = lax.Precision.HIGHEST
    for layer, p in enumerate(fused_layer_params):
        eq, flip_axis = ('tbd,dg->tbg', 0) if time_major else ('btd,dg->tbg', 1)
        # Hoisted input projection: fwd columns from x[t], bwd columns from x[T-1-t].
        gx = (jnp.einsum(eq, cur, p['wxf'], precision=hp)
              + jnp.einsum(eq, jnp.flip(cur, axis=flip_axis), p['wxb'], precision=hp)
              + p['b'][None, None, :])                       # (T, B, 8H)
        h0 = jnp.concatenate([h0_all[2 * layer], h0_all[2 * layer + 1]], axis=-1)
        c0 = jnp.concatenate([c0_all[2 * layer], c0_all[2 * layer + 1]], axis=-1)
        cur = bilstm_layer(gx, p['wh'], h0, c0)              # (T, B, 2H)
        time_major = True
    return jnp.transpose(cur, (1, 0, 2))                     # (B, T, 2H)


# -----------------------------------------------------------------------------
# Pure-JAX reference (lax.scan, raw un-fused params) for correctness checking.
# -----------------------------------------------------------------------------
def _lstm_ref_dir(x_tm, h0, c0, wx, wh, b, reverse):
    H = h0.shape[-1]

    def step(carry, x_t):
        h, c = carry
        gates = x_t @ wx + h @ wh + b
        i = jax.nn.sigmoid(gates[:, :H])
        f = jax.nn.sigmoid(gates[:, H:2 * H])
        g = jnp.tanh(gates[:, 2 * H:3 * H])
        o = jax.nn.sigmoid(gates[:, 3 * H:])
        c = f * c + i * g
        h = o * jnp.tanh(c)
        return (h, c), h

    xs = jnp.flip(x_tm, axis=0) if reverse else x_tm
    _, ys = jax.lax.scan(step, (h0, c0), xs)
    return jnp.flip(ys, axis=0) if reverse else ys


def bilstm_ref(x_bf, hidden, raw_layer_params):
    h0_all, c0_all = hidden
    out_tm = jnp.transpose(x_bf, (1, 0, 2))
    for layer, params in enumerate(raw_layer_params):
        fwd = _lstm_ref_dir(out_tm, h0_all[2 * layer], c0_all[2 * layer],
                            *params['fwd'], reverse=False)
        bwd = _lstm_ref_dir(out_tm, h0_all[2 * layer + 1], c0_all[2 * layer + 1],
                            *params['bwd'], reverse=True)
        out_tm = jnp.concatenate([fwd, bwd], axis=-1)
    return jnp.transpose(out_tm, (1, 0, 2))


# -----------------------------------------------------------------------------
# BiLSTM module forward (embedding gather + dropout identity + two BiLSTMs)
# -----------------------------------------------------------------------------
def bilstm_module_forward(word_ids, pos_ids, hidden,
                          word_matrix, pos_matrix,
                          word_fused_params, pos_fused_params):
    word_hidden, pos_hidden = hidden
    # Dropout is identity in eval mode; embeddings are frozen gathers (XLA glue).
    word_emb = jnp.take(word_matrix, word_ids, axis=0)   # (B, T, word_size)
    pos_emb = jnp.take(pos_matrix, pos_ids, axis=0)      # (B, T, pos_size)
    pos_outp = bilstm_forward(pos_emb, pos_hidden, pos_fused_params)
    word_outp = bilstm_forward(word_emb, word_hidden, word_fused_params)
    return word_outp, pos_outp, word_emb, pos_emb


def init_hidden(bsz, nlayers, nhid_word, nhid_pos):
    zw = jnp.zeros((nlayers * 2, bsz, nhid_word), jnp.float32)
    zp = jnp.zeros((nlayers * 2, bsz, nhid_pos), jnp.float32)
    return (zw, zw), (zp, zp)


if __name__ == "__main__":
    # Small, deterministic config consistent with the module's __init__.
    config = dict(word_vocab=50, pos_vocab=20, word_size=16, pos_size=8,
                  ninp_word=16, ninp_pos=8, word_nhid=32, pos_nhid=16,
                  nlayers=1, dropout=0.0)
    B, T = 2, 8

    key = jax.random.PRNGKey(0)
    key, kw, kp, kwi, kpi = jax.random.split(key, 5)
    word_matrix = jax.random.normal(kw, (config['word_vocab'], config['word_size']),
                                    jnp.float32) * 0.1
    pos_matrix = jax.random.normal(kp, (config['pos_vocab'], config['pos_size']),
                                   jnp.float32) * 0.1
    word_ids = jax.random.randint(kwi, (B, T), 0, config['word_vocab'])
    pos_ids = jax.random.randint(kpi, (B, T), 0, config['pos_vocab'])

    word_raw, key = make_lstm_params(key, config['nlayers'],
                                     config['ninp_word'], config['word_nhid'])
    pos_raw, key = make_lstm_params(key, config['nlayers'],
                                    config['ninp_pos'], config['pos_nhid'])
    word_fused = fuse_bilstm_params(word_raw, config['word_nhid'])
    pos_fused = fuse_bilstm_params(pos_raw, config['pos_nhid'])

    hidden = init_hidden(B, config['nlayers'], config['word_nhid'],
                         config['pos_nhid'])

    forward = jax.jit(bilstm_module_forward)
    word_outp, pos_outp, word_emb, pos_emb = forward(
        word_ids, pos_ids, hidden, word_matrix, pos_matrix,
        word_fused, pos_fused)
    jax.block_until_ready((word_outp, pos_outp, word_emb, pos_emb))

    # Shape checks (match nn.LSTM(batch_first=True, bidirectional=True) output).
    assert word_outp.shape == (B, T, 2 * config['word_nhid'])
    assert pos_outp.shape == (B, T, 2 * config['pos_nhid'])
    assert word_emb.shape == (B, T, config['word_size'])
    assert pos_emb.shape == (B, T, config['pos_size'])

    # Numerical check against a pure-JAX lax.scan reference using the RAW,
    # un-fused, un-permuted params (verifies the gate interleave/reorder fusion).
    word_ref = bilstm_ref(word_emb, hidden[0], word_raw)
    pos_ref = bilstm_ref(pos_emb, hidden[1], pos_raw)
    assert jnp.allclose(word_outp, word_ref, atol=1e-3, rtol=1e-3)
    assert jnp.allclose(pos_outp, pos_ref, atol=1e-3, rtol=1e-3)

    print("KERNEL_OK")
</pallas_src>

<mosaic_0001>
module attributes {stable_mosaic.version = 11 : i64} {
  func.func @_bilstm_layer_kernel(%arg0: i32, %arg1: memref<8x2x256xf32, #tpu.memory_space<vmem>>, %arg2: memref<64x256xf32, #tpu.memory_space<vmem>>, %arg3: memref<2x64xf32, #tpu.memory_space<vmem>>, %arg4: memref<2x64xf32, #tpu.memory_space<vmem>>, %arg5: memref<8x2x64xf32, #tpu.memory_space<vmem>>) attributes {dimension_semantics = [#tpu.dimension_semantics<arbitrary>], iteration_bounds = array<i64: 1>, scalar_prefetch = 0 : i64, scratch_operands = 0 : i64, tpu.core_type = #tpu.core_type<tc>, window_params = [{pipeline_mode = #tpu.pipeline_mode<synchronous>, transform_indices = @transform_0, window_bounds = array<i64: 8, 2, 256>}, {pipeline_mode = #tpu.pipeline_mode<synchronous>, transform_indices = @transform_1, window_bounds = array<i64: 64, 256>}, {pipeline_mode = #tpu.pipeline_mode<synchronous>, transform_indices = @transform_2, window_bounds = array<i64: 2, 64>}, {pipeline_mode = #tpu.pipeline_mode<synchronous>, transform_indices = @transform_3, window_bounds = array<i64: 2, 64>}, {pipeline_mode = #tpu.pipeline_mode<synchronous>, transform_indices = @transform_4, window_bounds = array<i64: 8, 2, 64>}]} {
    %c0 = arith.constant 0 : index
    %c0_0 = arith.constant 0 : index
    %0 = vector.load %arg2[%c0, %c0_0] : memref<64x256xf32, #tpu.memory_space<vmem>>, vector<64x256xf32>
    %c0_1 = arith.constant 0 : index
    %c0_2 = arith.constant 0 : index
    %1 = vector.load %arg3[%c0_1, %c0_2] : memref<2x64xf32, #tpu.memory_space<vmem>>, vector<2x64xf32>
    %c0_3 = arith.constant 0 : index
    %c0_4 = arith.constant 0 : index
    %2 = vector.load %arg4[%c0_3, %c0_4] : memref<2x64xf32, #tpu.memory_space<vmem>>, vector<2x64xf32>
    %c0_i32 = arith.constant 0 : i32
    %3 = arith.index_cast %c0_i32 : i32 to index
    %c0_5 = arith.constant 0 : index
    %c0_6 = arith.constant 0 : index
    %4 = vector.load %arg1[%3, %c0_5, %c0_6] : memref<8x2x256xf32, #tpu.memory_space<vmem>>, vector<1x2x256xf32>
    %5 = vector.shape_cast %4 : vector<1x2x256xf32> to vector<2x256xf32>
    %cst = arith.constant dense<0.000000e+00> : vector<2x256xf32>
    %6 = tpu.matmul %1, %0, %cst {dimension_numbers = #tpu.dot_dimension_numbers<[1], [0], [0], [1], [0, 0, 1, 1], [], []>} : vector<2x64xf32>, vector<64x256xf32>, vector<2x256xf32> -> vector<2x256xf32>
    %7 = arith.addf %5, %6 : vector<2x256xf32>
    %8 = vector.extract_strided_slice %7 {offsets = [0, 0], sizes = [2, 192], strides = [1, 1]} : vector<2x256xf32> to vector<2x192xf32>
    %9 = arith.negf %8 : vector<2x192xf32>
    %10 = math.exp %9 : vector<2x192xf32>
    %cst_7 = arith.constant 1.000000e+00 : f32
    %11 = vector.broadcast %cst_7 : f32 to vector<2x192xf32>
    %12 = arith.addf %11, %10 : vector<2x192xf32>
    %13 = arith.divf %11, %12 : vector<2x192xf32>
    %14 = vector.extract_strided_slice %7 {offsets = [0, 192], sizes = [2, 64], strides = [1, 1]} : vector<2x256xf32> to vector<2x64xf32>
    %15 = math.tanh %14 : vector<2x64xf32>
    %16 = vector.extract_strided_slice %13 {offsets = [0, 0], sizes = [2, 64], strides = [1, 1]} : vector<2x192xf32> to vector<2x64xf32>
    %17 = vector.extract_strided_slice %13 {offsets = [0, 64], sizes = [2, 64], strides = [1, 1]} : vector<2x192xf32> to vector<2x64xf32>
    %18 = vector.extract_strided_slice %13 {offsets = [0, 128], sizes = [2, 64], strides = [1, 1]} : vector<2x192xf32> to vector<2x64xf32>
    %19 = arith.mulf %17, %2 : vector<2x64xf32>
    %20 = arith.mulf %16, %15 : vector<2x64xf32>
    %21 = arith.addf %19, %20 : vector<2x64xf32>
    %22 = math.tanh %21 : vector<2x64xf32>
    %23 = arith.mulf %18, %22 : vector<2x64xf32>
    %24 = vector.extract_strided_slice %23 {offsets = [0, 0], sizes = [2, 32], strides = [1, 1]} : vector<2x64xf32> to vector<2x32xf32>
    %25 = arith.index_cast %c0_i32 : i32 to index
    %c0_8 = arith.constant 0 : index
    %c0_9 = arith.constant 0 : index
    %26 = vector.load %arg5[%25, %c0_8, %c0_9] : memref<8x2x64xf32, #tpu.memory_space<vmem>>, vector<1x2x32xf32>
    %27 = vector.shape_cast %26 : vector<1x2x32xf32> to vector<2x32xf32>
    %28 = vector.shape_cast %24 : vector<2x32xf32> to vector<1x2x32xf32>
    tpu.vector_store %arg5[%25, %c0_8, %c0_9], %28 {strides = array<i32>} : memref<8x2x64xf32, #tpu.memory_space<vmem>>, vector<1x2x32xf32>,
    %29 = vector.extract_strided_slice %23 {offsets = [0, 32], sizes = [2, 32], strides = [1, 1]} : vector<2x64xf32> to vector<2x32xf32>
    %c7_i32 = arith.constant 7 : i32
    %30 = arith.subi %c7_i32, %c0_i32 : i32
    %31 = arith.index_cast %30 : i32 to index
    %c0_10 = arith.constant 0 : index
    %c32 = arith.constant 32 : index
    %32 = vector.load %arg5[%31, %c0_10, %c32] : memref<8x2x64xf32, #tpu.memory_space<vmem>>, vector<1x2x32xf32>
    %33 = vector.shape_cast %32 : vector<1x2x32xf32> to vector<2x32xf32>
    %34 = vector.shape_cast %29 : vector<2x32xf32> to vector<1x2x32xf32>
    tpu.vector_store %arg5[%31, %c0_10, %c32], %34 {strides = array<i32>} : memref<8x2x64xf32, #tpu.memory_space<vmem>>, vector<1x2x32xf32>,
    %c1_i32 = arith.constant 1 : i32
    %35 = arith.index_cast %c1_i32 : i32 to index
    %c0_11 = arith.constant 0 : index
    %c0_12 = arith.constant 0 : index
    %36 = vector.load %arg1[%35, %c0_11, %c0_12] : memref<8x2x256xf32, #tpu.memory_space<vmem>>, vector<1x2x256xf32>
    %37 = vector.shape_cast %36 : vector<1x2x256xf32> to vector<2x256xf32>
    %cst_13 = arith.constant dense<0.000000e+00> : vector<2x256xf32>
    %38 = tpu.matmul %23, %0, %cst_13 {dimension_numbers = #tpu.dot_dimension_numbers<[1], [0], [0], [1], [0, 0, 1, 1], [], []>} : vector<2x64xf32>, vector<64x256xf32>, vector<2x256xf32> -> vector<2x256xf32>
    %39 = arith.addf %37, %38 : vector<2x256xf32>
    %40 = vector.extract_strided_slice %39 {offsets = [0, 0], sizes = [2, 192], strides = [1, 1]} : vector<2x256xf32> to vector<2x192xf32>
    %41 = arith.negf %40 : vector<2x192xf32>
    %42 = math.exp %41 : vector<2x192xf32>
    %cst_14 = arith.constant 1.000000e+00 : f32
    %43 = vector.broadcast %cst_14 : f32 to vector<2x192xf32>
    %44 = arith.addf %43, %42 : vector<2x192xf32>
    %45 = arith.divf %43, %44 : vector<2x192xf32>
    %46 = vector.extract_strided_slice %39 {offsets = [0, 192], sizes = [2, 64], strides = [1, 1]} : vector<2x256xf32> to vector<2x64xf32>
    %47 = math.tanh %46 : vector<2x64xf32>
    %48 = vector.extract_strided_slice %45 {offsets = [0, 0], sizes = [2, 64], strides = [1, 1]} : vector<2x192xf32> to vector<2x64xf32>
    %49 = vector.extract_strided_slice %45 {offsets = [0, 64], sizes = [2, 64], strides = [1, 1]} : vector<2x192xf32> to vector<2x64xf32>
    %50 = vector.extract_strided_slice %45 {offsets = [0, 128], sizes = [2, 64], strides = [1, 1]} : vector<2x192xf32> to vector<2x64xf32>
    %51 = arith.mulf %49, %21 : vector<2x64xf32>
    %52 = arith.mulf %48, %47 : vector<2x64xf32>
    %53 = arith.addf %51, %52 : vector<2x64xf32>
    %54 = math.tanh %53 : vector<2x64xf32>
    %55 = arith.mulf %50, %54 : vector<2x64xf32>
    %56 = vector.extract_strided_slice %55 {offsets = [0, 0], sizes = [2, 32], strides = [1, 1]} : vector<2x64xf32> to vector<2x32xf32>
    %57 = arith.index_cast %c1_i32 : i32 to index
    %c0_15 = arith.constant 0 : index
    %c0_16 = arith.constant 0 : index
    %58 = vector.load %arg5[%57, %c0_15, %c0_16] : memref<8x2x64xf32, #tpu.memory_space<vmem>>, vector<1x2x32xf32>
    %59 = vector.shape_cast %58 : vector<1x2x32xf32> to vector<2x32xf32>
    %60 = vector.shape_cast %56 : vector<2x32xf32> to vector<1x2x32xf32>
    tpu.vector_store %arg5[%57, %c0_15, %c0_16], %60 {strides = array<i32>} : memref<8x2x64xf32, #tpu.memory_space<vmem>>, vector<1x2x32xf32>,
    %61 = vector.extract_strided_slice %55 {offsets = [0, 32], sizes = [2, 32], strides = [1, 1]} : vector<2x64xf32> to vector<2x32xf32>
    %c7_i32_17 = arith.constant 7 : i32
    %62 = arith.subi %c7_i32_17, %c1_i32 : i32
    %63 = arith.index_cast %62 : i32 to index
    %c0_18 = arith.constant 0 : index
    %c32_19 = arith.constant 32 : index
    %64 = vector.load %arg5[%63, %c0_18, %c32_19] : memref<8x2x64xf32, #tpu.memory_space<vmem>>, vector<1x2x32xf32>
    %65 = vector.shape_cast %64 : vector<1x2x32xf32> to vector<2x32xf32>
    %66 = vector.shape_cast %61 : vector<2x32xf32> to vector<1x2x32xf32>
    tpu.vector_store %arg5[%63, %c0_18, %c32_19], %66 {strides = array<i32>} : memref<8x2x64xf32, #tpu.memory_space<vmem>>, vector<1x2x32xf32>,
    %c2_i32 = arith.constant 2 : i32
    %67 = arith.index_cast %c2_i32 : i32 to index
    %c0_20 = arith.constant 0 : index
    %c0_21 = arith.constant 0 : index
    %68 = vector.load %arg1[%67, %c0_20, %c0_21] : memref<8x2x256xf32, #tpu.memory_space<vmem>>, vector<1x2x256xf32>
    %69 = vector.shape_cast %68 : vector<1x2x256xf32> to vector<2x256xf32>
    %cst_22 = arith.constant dense<0.000000e+00> : vector<2x256xf32>
    %70 = tpu.matmul %55, %0, %cst_22 {dimension_numbers = #tpu.dot_dimension_numbers<[1], [0], [0], [1], [0, 0, 1, 1], [], []>} : vector<2x64xf32>, vector<64x256xf32>, vector<2x256xf32> -> vector<2x256xf32>
    %71 = arith.addf %69, %70 : vector<2x256xf32>
    %72 = vector.extract_strided_slice %71 {offsets = [0, 0], sizes = [2, 192], strides = [1, 1]} : vector<2x256xf32> to vector<2x192xf32>
    %73 = arith.negf %72 : vector<2x192xf32>
    %74 = math.exp %73 : vector<2x192xf32>
    %cst_23 = arith.constant 1.000000e+00 : f32
    %75 = vector.broadcast %cst_23 : f32 to vector<2x192xf32>
    %76 = arith.addf %75, %74 : vector<2x192xf32>
    %77 = arith.divf %75, %76 : vector<2x192xf32>
    %78 = vector.extract_strided_slice %71 {offsets = [0, 192], sizes = [2, 64], strides = [1, 1]} : vector<2x256xf32> to vector<2x64xf32>
    %79 = math.tanh %78 : vector<2x64xf32>
    %80 = vector.extract_strided_slice %77 {offsets = [0, 0], sizes = [2, 64], strides = [1, 1]} : vector<2x192xf32> to vector<2x64xf32>
    %81 = vector.extract_strided_slice %77 {offsets = [0, 64], sizes = [2, 64], strides = [1, 1]} : vector<2x192xf32> to vector<2x64xf32>
    %82 = vector.extract_strided_slice %77 {offsets = [0, 128], sizes = [2, 64], strides = [1, 1]} : vector<2x192xf32> to vector<2x64xf32>
    %83 = arith.mulf %81, %53 : vector<2x64xf32>
    %84 = arith.mulf %80, %79 : vector<2x64xf32>
    %85 = arith.addf %83, %84 : vector<2x64xf32>
    %86 = math.tanh %85 : vector<2x64xf32>
    %87 = arith.mulf %82, %86 : vector<2x64xf32>
    %88 = vector.extract_strided_slice %87 {offsets = [0, 0], sizes = [2, 32], strides = [1, 1]} : vector<2x64xf32> to vector<2x32xf32>
    %89 = arith.index_cast %c2_i32 : i32 to index
    %c0_24 = arith.constant 0 : index
    %c0_25 = arith.constant 0 : index
    %90 = vector.load %arg5[%89, %c0_24, %c0_25] : memref<8x2x64xf32, #tpu.memory_space<vmem>>, vector<1x2x32xf32>
    %91 = vector.shape_cast %90 : vector<1x2x32xf32> to vector<2x32xf32>
    %92 = vector.shape_cast %88 : vector<2x32xf32> to vector<1x2x32xf32>
    tpu.vector_store %arg5[%89, %c0_24, %c0_25], %92 {strides = array<i32>} : memref<8x2x64xf32, #tpu.memory_space<vmem>>, vector<1x2x32xf32>,
    %93 = vector.extract_strided_slice %87 {offsets = [0, 32], sizes = [2, 32], strides = [1, 1]} : vector<2x64xf32> to vector<2x32xf32>
    %c7_i32_26 = arith.constant 7 : i32
    %94 = arith.subi %c7_i32_26, %c2_i32 : i32
    %95 = arith.index_cast %94 : i32 to index
    %c0_27 = arith.constant 0 : index
    %c32_28 = arith.constant 32 : index
    %96 = vector.load %arg5[%95, %c0_27, %c32_28] : memref<8x2x64xf32, #tpu.memory_space<vmem>>, vector<1x2x32xf32>
    %97 = vector.shape_cast %96 : vector<1x2x32xf32> to vector<2x32xf32>
    %98 = vector.shape_cast %93 : vector<2x32xf32> to vector<1x2x32xf32>
    tpu.vector_store %arg5[%95, %c0_27, %c32_28], %98 {strides = array<i32>} : memref<8x2x64xf32, #tpu.memory_space<vmem>>, vector<1x2x32xf32>,
    %c3_i32 = arith.constant 3 : i32
    %99 = arith.index_cast %c3_i32 : i32 to index
    %c0_29 = arith.constant 0 : index
    %c0_30 = arith.constant 0 : index
    %100 = vector.load %arg1[%99, %c0_29, %c0_30] : memref<8x2x256xf32, #tpu.memory_space<vmem>>, vector<1x2x256xf32>
    %101 = vector.shape_cast %100 : vector<1x2x256xf32> to vector<2x256xf32>
    %cst_31 = arith.constant dense<0.000000e+00> : vector<2x256xf32>
    %102 = tpu.matmul %87, %0, %cst_31 {dimension_numbers = #tpu.dot_dimension_numbers<[1], [0], [0], [1], [0, 0, 1, 1], [], []>} : vector<2x64xf32>, vector<64x256xf32>, vector<2x256xf32> -> vector<2x256xf32>
    %103 = arith.addf %101, %102 : vector<2x256xf32>
    %104 = vector.extract_strided_slice %103 {offsets = [0, 0], sizes = [2, 192], strides = [1, 1]} : vector<2x256xf32> to vector<2x192xf32>
    %105 = arith.negf %104 : vector<2x192xf32>
    %106 = math.exp %105 : vector<2x192xf32>
    %cst_32 = arith.constant 1.000000e+00 : f32
    %107 = vector.broadcast %cst_32 : f32 to vector<2x192xf32>
    %108 = arith.addf %107, %106 : vector<2x192xf32>
    %109 = arith.divf %107, %108 : vector<2x192xf32>
    %110 = vector.extract_strided_slice %103 {offsets = [0, 192], sizes = [2, 64], strides = [1, 1]} : vector<2x256xf32> to vector<2x64xf32>
    %111 = math.tanh %110 : vector<2x64xf32>
    %112 = vector.extract_strided_slice %109 {offsets = [0, 0], sizes = [2, 64], strides = [1, 1]} : vector<2x192xf32> to vector<2x64xf32>
    %113 = vector.extract_strided_slice %109 {offsets = [0, 64], sizes = [2, 64], strides = [1, 1]} : vector<2x192xf32> to vector<2x64xf32>
    %114 = vector.extract_strided_slice %109 {offsets = [0, 128], sizes = [2, 64], strides = [1, 1]} : vector<2x192xf32> to vector<2x64xf32>
    %115 = arith.mulf %113, %85 : vector<2x64xf32>
    %116 = arith.mulf %112, %111 : vector<2x64xf32>
    %117 = arith.addf %115, %116 : vector<2x64xf32>
    %118 = math.tanh %117 : vector<2x64xf32>
    %119 = arith.mulf %114, %118 : vector<2x64xf32>
    %120 = vector.extract_strided_slice %119 {offsets = [0, 0], sizes = [2, 32], strides = [1, 1]} : vector<2x64xf32> to vector<2x32xf32>
    %121 = arith.index_cast %c3_i32 : i32 to index
    %c0_33 = arith.constant 0 : index
    %c0_34 = arith.constant 0 : index
    %122 = vector.load %arg5[%121, %c0_33, %c0_34] : memref<8x2x64xf32, #tpu.memory_space<vmem>>, vector<1x2x32xf32>
    %123 = vector.shape_cast %122 : vector<1x2x32xf32> to vector<2x32xf32>
    %124 = vector.shape_cast %120 : vector<2x32xf32> to vector<1x2x32xf32>
    tpu.vector_store %arg5[%121, %c0_33, %c0_34], %124 {strides = array<i32>} : memref<8x2x64xf32, #tpu.memory_space<vmem>>, vector<1x2x32xf32>,
    %125 = vector.extract_strided_slice %119 {offsets = [0, 32], sizes = [2, 32], strides = [1, 1]} : vector<2x64xf32> to vector<2x32xf32>
    %c7_i32_35 = arith.constant 7 : i32
    %126 = arith.subi %c7_i32_35, %c3_i32 : i32
    %127 = arith.index_cast %126 : i32 to index
    %c0_36 = arith.constant 0 : index
    %c32_37 = arith.constant 32 : index
    %128 = vector.load %arg5[%127, %c0_36, %c32_37] : memref<8x2x64xf32, #tpu.memory_space<vmem>>, vector<1x2x32xf32>
    %129 = vector.shape_cast %128 : vector<1x2x32xf32> to vector<2x32xf32>
    %130 = vector.shape_cast %125 : vector<2x32xf32> to vector<1x2x32xf32>
    tpu.vector_store %arg5[%127, %c0_36, %c32_37], %130 {strides = array<i32>} : memref<8x2x64xf32, #tpu.memory_space<vmem>>, vector<1x2x32xf32>,
    %c4_i32 = arith.constant 4 : i32
    %131 = arith.index_cast %c4_i32 : i32 to index
    %c0_38 = arith.constant 0 : index
    %c0_39 = arith.constant 0 : index
    %132 = vector.load %arg1[%131, %c0_38, %c0_39] : memref<8x2x256xf32, #tpu.memory_space<vmem>>, vector<1x2x256xf32>
    %133 = vector.shape_cast %132 : vector<1x2x256xf32> to vector<2x256xf32>
    %cst_40 = arith.constant dense<0.000000e+00> : vector<2x256xf32>
    %134 = tpu.matmul %119, %0, %cst_40 {dimension_numbers = #tpu.dot_dimension_numbers<[1], [0], [0], [1], [0, 0, 1, 1], [], []>} : vector<2x64xf32>, vector<64x256xf32>, vector<2x256xf32> -> vector<2x256xf32>
    %135 = arith.addf %133, %134 : vector<2x256xf32>
    %136 = vector.extract_strided_slice %135 {offsets = [0, 0], sizes = [2, 192], strides = [1, 1]} : vector<2x256xf32> to vector<2x192xf32>
    %137 = arith.negf %136 : vector<2x192xf32>
    %138 = math.exp %137 : vector<2x192xf32>
    %cst_41 = arith.constant 1.000000e+00 : f32
    %139 = vector.broadcast %cst_41 : f32 to vector<2x192xf32>
    %140 = arith.addf %139, %138 : vector<2x192xf32>
    %141 = arith.divf %139, %140 : vector<2x192xf32>
    %142 = vector.extract_strided_slice %135 {offsets = [0, 192], sizes = [2, 64], strides = [1, 1]} : vector<2x256xf32> to vector<2x64xf32>
    %143 = math.tanh %142 : vector<2x64xf32>
    %144 = vector.extract_strided_slice %141 {offsets = [0, 0], sizes = [2, 64], strides = [1, 1]} : vector<2x192xf32> to vector<2x64xf32>
    %145 = vector.extract_strided_slice %141 {offsets = [0, 64], sizes = [2, 64], strides = [1, 1]} : vector<2x192xf32> to vector<2x64xf32>
    %146 = vector.extract_strided_slice %141 {offsets = [0, 128], sizes = [2, 64], strides = [1, 1]} : vector<2x192xf32> to vector<2x64xf32>
    %147 = arith.mulf %145, %117 : vector<2x64xf32>
    %148 = arith.mulf %144, %143 : vector<2x64xf32>
    %149 = arith.addf %147, %148 : vector<2x64xf32>
    %150 = math.tanh %149 : vector<2x64xf32>
    %151 = arith.mulf %146, %150 : vector<2x64xf32>
    %152 = vector.extract_strided_slice %151 {offsets = [0, 0], sizes = [2, 32], strides = [1, 1]} : vector<2x64xf32> to vector<2x32xf32>
    %153 = arith.index_cast %c4_i32 : i32 to index
    %c0_42 = arith.constant 0 : index
    %c0_43 = arith.constant 0 : index
    %154 = vector.load %arg5[%153, %c0_42, %c0_43] : memref<8x2x64xf32, #tpu.memory_space<vmem>>, vector<1x2x32xf32>
    %155 = vector.shape_cast %154 : vector<1x2x32xf32> to vector<2x32xf32>
    %156 = vector.shape_cast %152 : vector<2x32xf32> to vector<1x2x32xf32>
    tpu.vector_store %arg5[%153, %c0_42, %c0_43], %156 {strides = array<i32>} : memref<8x2x64xf32, #tpu.memory_space<vmem>>, vector<1x2x32xf32>,
    %157 = vector.extract_strided_slice %151 {offsets = [0, 32], sizes = [2, 32], strides = [1, 1]} : vector<2x64xf32> to vector<2x32xf32>
    %c7_i32_44 = arith.constant 7 : i32
    %158 = arith.subi %c7_i32_44, %c4_i32 : i32
    %159 = arith.index_cast %158 : i32 to index
    %c0_45 = arith.constant 0 : index
    %c32_46 = arith.constant 32 : index
    %160 = vector.load %arg5[%159, %c0_45, %c32_46] : memref<8x2x64xf32, #tpu.memory_space<vmem>>, vector<1x2x32xf32>
    %161 = vector.shape_cast %160 : vector<1x2x32xf32> to vector<2x32xf32>
    %162 = vector.shape_cast %157 : vector<2x32xf32> to vector<1x2x32xf32>
    tpu.vector_store %arg5[%159, %c0_45, %c32_46], %162 {strides = array<i32>} : memref<8x2x64xf32, #tpu.memory_space<vmem>>, vector<1x2x32xf32>,
    %c5_i32 = arith.constant 5 : i32
    %163 = arith.index_cast %c5_i32 : i32 to index
    %c0_47 = arith.constant 0 : index
    %c0_48 = arith.constant 0 : index
    %164 = vector.load %arg1[%163, %c0_47, %c0_48] : memref<8x2x256xf32, #tpu.memory_space<vmem>>, vector<1x2x256xf32>
    %165 = vector.shape_cast %164 : vector<1x2x256xf32> to vector<2x256xf32>
    %cst_49 = arith.constant dense<0.000000e+00> : vector<2x256xf32>
    %166 = tpu.matmul %151, %0, %cst_49 {dimension_numbers = #tpu.dot_dimension_numbers<[1], [0], [0], [1], [0, 0, 1, 1], [], []>} : vector<2x64xf32>, vector<64x256xf32>, vector<2x256xf32> -> vector<2x256xf32>
    %167 = arith.addf %165, %166 : vector<2x256xf32>
    %168 = vector.extract_strided_slice %167 {offsets = [0, 0], sizes = [2, 192], strides = [1, 1]} : vector<2x256xf32> to vector<2x192xf32>
    %169 = arith.negf %168 : vector<2x192xf32>
    %170 = math.exp %169 : vector<2x192xf32>
    %cst_50 = arith.constant 1.000000e+00 : f32
    %171 = vector.broadcast %cst_50 : f32 to vector<2x192xf32>
    %172 = arith.addf %171, %170 : vector<2x192xf32>
    %173 = arith.divf %171, %172 : vector<2x192xf32>
    %174 = vector.extract_strided_slice %167 {offsets = [0, 192], sizes = [2, 64], strides = [1, 1]} : vector<2x256xf32> to vector<2x64xf32>
    %175 = math.tanh %174 : vector<2x64xf32>
    %176 = vector.extract_strided_slice %173 {offsets = [0, 0], sizes = [2, 64], strides = [1, 1]} : vector<2x192xf32> to vector<2x64xf32>
    %177 = vector.extract_strided_slice %173 {offsets = [0, 64], sizes = [2, 64], strides = [1, 1]} : vector<2x192xf32> to vector<2x64xf32>
    %178 = vector.extract_strided_slice %173 {offsets = [0, 128], sizes = [2, 64], strides = [1, 1]} : vector<2x192xf32> to vector<2x64xf32>
    %179 = arith.mulf %177, %149 : vector<2x64xf32>
    %180 = arith.mulf %176, %175 : vector<2x64xf32>
    %181 = arith.addf %179, %180 : vector<2x64xf32>
    %182 = math.tanh %181 : vector<2x64xf32>
    %183 = arith.mulf %178, %182 : vector<2x64xf32>
    %184 = vector.extract_strided_slice %183 {offsets = [0, 0], sizes = [2, 32], strides = [1, 1]} : vector<2x64xf32> to vector<2x32xf32>
    %185 = arith.index_cast %c5_i32 : i32 to index
    %c0_51 = arith.constant 0 : index
    %c0_52 = arith.constant 0 : index
    %186 = vector.load %arg5[%185, %c0_51, %c0_52] : memref<8x2x64xf32, #tpu.memory_space<vmem>>, vector<1x2x32xf32>
    %187 = vector.shape_cast %186 : vector<1x2x32xf32> to vector<2x32xf32>
    %188 = vector.shape_cast %184 : vector<2x32xf32> to vector<1x2x32xf32>
    tpu.vector_store %arg5[%185, %c0_51, %c0_52], %188 {strides = array<i32>} : memref<8x2x64xf32, #tpu.memory_space<vmem>>, vector<1x2x32xf32>,
    %189 = vector.extract_strided_slice %183 {offsets = [0, 32], sizes = [2, 32], strides = [1, 1]} : vector<2x64xf32> to vector<2x32xf32>
    %c7_i32_53 = arith.constant 7 : i32
    %190 = arith.subi %c7_i32_53, %c5_i32 : i32
    %191 = arith.index_cast %190 : i32 to index
    %c0_54 = arith.constant 0 : index
    %c32_55 = arith.constant 32 : index
    %192 = vector.load %arg5[%191, %c0_54, %c32_55] : memref<8x2x64xf32, #tpu.memory_space<vmem>>, vector<1x2x32xf32>
    %193 = vector.shape_cast %192 : vector<1x2x32xf32> to vector<2x32xf32>
    %194 = vector.shape_cast %189 : vector<2x32xf32> to vector<1x2x32xf32>
    tpu.vector_store %arg5[%191, %c0_54, %c32_55], %194 {strides = array<i32>} : memref<8x2x64xf32, #tpu.memory_space<vmem>>, vector<1x2x32xf32>,
    %c6_i32 = arith.constant 6 : i32
    %195 = arith.index_cast %c6_i32 : i32 to index
    %c0_56 = arith.constant 0 : index
    %c0_57 = arith.constant 0 : index
    %196 = vector.load %arg1[%195, %c0_56, %c0_57] : memref<8x2x256xf32, #tpu.memory_space<vmem>>, vector<1x2x256xf32>
    %197 = vector.shape_cast %196 : vector<1x2x256xf32> to vector<2x256xf32>
    %cst_58 = arith.constant dense<0.000000e+00> : vector<2x256xf32>
    %198 = tpu.matmul %183, %0, %cst_58 {dimension_numbers = #tpu.dot_dimension_numbers<[1], [0], [0], [1], [0, 0, 1, 1], [], []>} : vector<2x64xf32>, vector<64x256xf32>, vector<2x256xf32> -> vector<2x256xf32>
    %199 = arith.addf %197, %198 : vector<2x256xf32>
    %200 = vector.extract_strided_slice %199 {offsets = [0, 0], sizes = [2, 192], strides = [1, 1]} : vector<2x256xf32> to vector<2x192xf32>
    %201 = arith.negf %200 : vector<2x192xf32>
    %202 = math.exp %201 : vector<2x192xf32>
    %cst_59 = arith.constant 1.000000e+00 : f32
    %203 = vector.broadcast %cst_59 : f32 to vector<2x192xf32>
    %204 = arith.addf %203, %202 : vector<2x192xf32>
    %205 = arith.divf %203, %204 : vector<2x192xf32>
    %206 = vector.extract_strided_slice %199 {offsets = [0, 192], sizes = [2, 64], strides = [1, 1]} : vector<2x256xf32> to vector<2x64xf32>
    %207 = math.tanh %206 : vector<2x64xf32>
    %208 = vector.extract_strided_slice %205 {offsets = [0, 0], sizes = [2, 64], strides = [1, 1]} : vector<2x192xf32> to vector<2x64xf32>
    %209 = vector.extract_strided_slice %205 {offsets = [0, 64], sizes = [2, 64], strides = [1, 1]} : vector<2x192xf32> to vector<2x64xf32>
    %210 = vector.extract_strided_slice %205 {offsets = [0, 128], sizes = [2, 64], strides = [1, 1]} : vector<2x192xf32> to vector<2x64xf32>
    %211 = arith.mulf %209, %181 : vector<2x64xf32>
    %212 = arith.mulf %208, %207 : vector<2x64xf32>
    %213 = arith.addf %211, %212 : vector<2x64xf32>
    %214 = math.tanh %213 : vector<2x64xf32>
    %215 = arith.mulf %210, %214 : vector<2x64xf32>
    %216 = vector.extract_strided_slice %215 {offsets = [0, 0], sizes = [2, 32], strides = [1, 1]} : vector<2x64xf32> to vector<2x32xf32>
    %217 = arith.index_cast %c6_i32 : i32 to index
    %c0_60 = arith.constant 0 : index
    %c0_61 = arith.constant 0 : index
    %218 = vector.load %arg5[%217, %c0_60, %c0_61] : memref<8x2x64xf32, #tpu.memory_space<vmem>>, vector<1x2x32xf32>
    %219 = vector.shape_cast %218 : vector<1x2x32xf32> to vector<2x32xf32>
    %220 = vector.shape_cast %216 : vector<2x32xf32> to vector<1x2x32xf32>
    tpu.vector_store %arg5[%217, %c0_60, %c0_61], %220 {strides = array<i32>} : memref<8x2x64xf32, #tpu.memory_space<vmem>>, vector<1x2x32xf32>,
    %221 = vector.extract_strided_slice %215 {offsets = [0, 32], sizes = [2, 32], strides = [1, 1]} : vector<2x64xf32> to vector<2x32xf32>
    %c7_i32_62 = arith.constant 7 : i32
    %222 = arith.subi %c7_i32_62, %c6_i32 : i32
    %223 = arith.index_cast %222 : i32 to index
    %c0_63 = arith.constant 0 : index
    %c32_64 = arith.constant 32 : index
    %224 = vector.load %arg5[%223, %c0_63, %c32_64] : memref<8x2x64xf32, #tpu.memory_space<vmem>>, vector<1x2x32xf32>
    %225 = vector.shape_cast %224 : vector<1x2x32xf32> to vector<2x32xf32>
    %226 = vector.shape_cast %221 : vector<2x32xf32> to vector<1x2x32xf32>
    tpu.vector_store %arg5[%223, %c0_63, %c32_64], %226 {strides = array<i32>} : memref<8x2x64xf32, #tpu.memory_space<vmem>>, vector<1x2x32xf32>,
    %c7_i32_65 = arith.constant 7 : i32
    %227 = arith.index_cast %c7_i32_65 : i32 to index
    %c0_66 = arith.constant 0 : index
    %c0_67 = arith.constant 0 : index
    %228 = vector.load %arg1[%227, %c0_66, %c0_67] : memref<8x2x256xf32, #tpu.memory_space<vmem>>, vector<1x2x256xf32>
    %229 = vector.shape_cast %228 : vector<1x2x256xf32> to vector<2x256xf32>
    %cst_68 = arith.constant dense<0.000000e+00> : vector<2x256xf32>
    %230 = tpu.matmul %215, %0, %cst_68 {dimension_numbers = #tpu.dot_dimension_numbers<[1], [0], [0], [1], [0, 0, 1, 1], [], []>} : vector<2x64xf32>, vector<64x256xf32>, vector<2x256xf32> -> vector<2x256xf32>
    %231 = arith.addf %229, %230 : vector<2x256xf32>
    %232 = vector.extract_strided_slice %231 {offsets = [0, 0], sizes = [2, 192], strides = [1, 1]} : vector<2x256xf32> to vector<2x192xf32>
    %233 = arith.negf %232 : vector<2x192xf32>
    %234 = math.exp %233 : vector<2x192xf32>
    %cst_69 = arith.constant 1.000000e+00 : f32
    %235 = vector.broadcast %cst_69 : f32 to vector<2x192xf32>
    %236 = arith.addf %235, %234 : vector<2x192xf32>
    %237 = arith.divf %235, %236 : vector<2x192xf32>
    %238 = vector.extract_strided_slice %231 {offsets = [0, 192], sizes = [2, 64], strides = [1, 1]} : vector<2x256xf32> to vector<2x64xf32>
    %239 = math.tanh %238 : vector<2x64xf32>
    %240 = vector.extract_strided_slice %237 {offsets = [0, 0], sizes = [2, 64], strides = [1, 1]} : vector<2x192xf32> to vector<2x64xf32>
    %241 = vector.extract_strided_slice %237 {offsets = [0, 64], sizes = [2, 64], strides = [1, 1]} : vector<2x192xf32> to vector<2x64xf32>
    %242 = vector.extract_strided_slice %237 {offsets = [0, 128], sizes = [2, 64], strides = [1, 1]} : vector<2x192xf32> to vector<2x64xf32>
    %243 = arith.mulf %241, %213 : vector<2x64xf32>
    %244 = arith.mulf %240, %239 : vector<2x64xf32>
    %245 = arith.addf %243, %244 : vector<2x64xf32>
    %246 = math.tanh %245 : vector<2x64xf32>
    %247 = arith.mulf %242, %246 : vector<2x64xf32>
    %248 = vector.extract_strided_slice %247 {offsets = [0, 0], sizes = [2, 32], strides = [1, 1]} : vector<2x64xf32> to vector<2x32xf32>
    %249 = arith.index_cast %c7_i32_65 : i32 to index
    %c0_70 = arith.constant 0 : index
    %c0_71 = arith.constant 0 : index
    %250 = vector.load %arg5[%249, %c0_70, %c0_71] : memref<8x2x64xf32, #tpu.memory_space<vmem>>, vector<1x2x32xf32>
    %251 = vector.shape_cast %250 : vector<1x2x32xf32> to vector<2x32xf32>
    %252 = vector.shape_cast %248 : vector<2x32xf32> to vector<1x2x32xf32>
    tpu.vector_store %arg5[%249, %c0_70, %c0_71], %252 {strides = array<i32>} : memref<8x2x64xf32, #tpu.memory_space<vmem>>, vector<1x2x32xf32>,
    %253 = vector.extract_strided_slice %247 {offsets = [0, 32], sizes = [2, 32], strides = [1, 1]} : vector<2x64xf32> to vector<2x32xf32>
    %c7_i32_72 = arith.constant 7 : i32
    %254 = arith.subi %c7_i32_72, %c7_i32_65 : i32
    %255 = arith.index_cast %254 : i32 to index
    %c0_73 = arith.constant 0 : index
    %c32_74 = arith.constant 32 : index
    %256 = vector.load %arg5[%255, %c0_73, %c32_74] : memref<8x2x64xf32, #tpu.memory_space<vmem>>, vector<1x2x32xf32>
    %257 = vector.shape_cast %256 : vector<1x2x32xf32> to vector<2x32xf32>
    %258 = vector.shape_cast %253 : vector<2x32xf32> to vector<1x2x32xf32>
    tpu.vector_store %arg5[%255, %c0_73, %c32_74], %258 {strides = array<i32>} : memref<8x2x64xf32, #tpu.memory_space<vmem>>, vector<1x2x32xf32>,
    %c8_i32 = arith.constant 8 : i32
    return
  }
  func.func @transform_0(%arg0: i32) -> (i32, i32, i32) {
    %c0_i32 = arith.constant 0 : i32
    %c0_i32_0 = arith.constant 0 : i32
    %c0_i32_1 = arith.constant 0 : i32
    %c0_i32_2 = arith.constant 0 : i32
    return %c0_i32, %c0_i32_0, %c0_i32_1 : i32, i32, i32
  }
  func.func @transform_1(%arg0: i32) -> (i32, i32) {
    %c0_i32 = arith.constant 0 : i32
    %c0_i32_0 = arith.constant 0 : i32
    %c0_i32_1 = arith.constant 0 : i32
    return %c0_i32, %c0_i32_0 : i32, i32
  }
  func.func @transform_2(%arg0: i32) -> (i32, i32) {
    %c0_i32 = arith.constant 0 : i32
    %c0_i32_0 = arith.constant 0 : i32
    %c0_i32_1 = arith.constant 0 : i32
    return %c0_i32, %c0_i32_0 : i32, i32
  }
  func.func @transform_3(%arg0: i32) -> (i32, i32) {
    %c0_i32 = arith.constant 0 : i32
    %c0_i32_0 = arith.constant 0 : i32
    %c0_i32_1 = arith.constant 0 : i32
    return %c0_i32, %c0_i32_0 : i32, i32
  }
  func.func @transform_4(%arg0: i32) -> (i32, i32, i32) {
    %c0_i32 = arith.constant 0 : i32
    %c0_i32_0 = arith.constant 0 : i32
    %c0_i32_1 = arith.constant 0 : i32
    %c0_i32_2 = arith.constant 0 : i32
    return %c0_i32, %c0_i32_0, %c0_i32_1 : i32, i32, i32
  }
}

module attributes {stable_mosaic.version = 11 : i64} {
  func.func @_bilstm_layer_kernel(%arg0: i32, %arg1: memref<8x2x128xf32, #tpu.memory_space<vmem>>, %arg2: memref<32x128xf32, #tpu.memory_space<vmem>>, %arg3: memref<2x32xf32, #tpu.memory_space<vmem>>, %arg4: memref<2x32xf32, #tpu.memory_space<vmem>>, %arg5: memref<8x2x32xf32, #tpu.memory_space<vmem>>) attributes {dimension_semantics = [#tpu.dimension_semantics<arbitrary>], iteration_bounds = array<i64: 1>, scalar_prefetch = 0 : i64, scratch_operands = 0 : i64, tpu.core_type = #tpu.core_type<tc>, window_params = [{pipeline_mode = #tpu.pipeline_mode<synchronous>, transform_indices = @transform_0, window_bounds = array<i64: 8, 2, 128>}, {pipeline_mode = #tpu.pipeline_mode<synchronous>, transform_indices = @transform_1, window_bounds = array<i64: 32, 128>}, {pipeline_mode = #tpu.pipeline_mode<synchronous>, transform_indices = @transform_2, window_bounds = array<i64: 2, 32>}, {pipeline_mode = #tpu.pipeline_mode<synchronous>, transform_indices = @transform_3, window_bounds = array<i64: 2, 32>}, {pipeline_mode = #tpu.pipeline_mode<synchronous>, transform_indices = @transform_4, window_bounds = array<i64: 8, 2, 32>}]} {
    %c0 = arith.constant 0 : index
    %c0_0 = arith.constant 0 : index
    %0 = vector.load %arg2[%c0, %c0_0] : memref<32x128xf32, #tpu.memory_space<vmem>>, vector<32x128xf32>
    %c0_1 = arith.constant 0 : index
    %c0_2 = arith.constant 0 : index
    %1 = vector.load %arg3[%c0_1, %c0_2] : memref<2x32xf32, #tpu.memory_space<vmem>>, vector<2x32xf32>
    %c0_3 = arith.constant 0 : index
    %c0_4 = arith.constant 0 : index
    %2 = vector.load %arg4[%c0_3, %c0_4] : memref<2x32xf32, #tpu.memory_space<vmem>>, vector<2x32xf32>
    %c0_i32 = arith.constant 0 : i32
    %3 = arith.index_cast %c0_i32 : i32 to index
    %c0_5 = arith.constant 0 : index
    %c0_6 = arith.constant 0 : index
    %4 = vector.load %arg1[%3, %c0_5, %c0_6] : memref<8x2x128xf32, #tpu.memory_space<vmem>>, vector<1x2x128xf32>
    %5 = vector.shape_cast %4 : vector<1x2x128xf32> to vector<2x128xf32>
    %cst = arith.constant dense<0.000000e+00> : vector<2x128xf32>
    %6 = tpu.matmul %1, %0, %cst {dimension_numbers = #tpu.dot_dimension_numbers<[1], [0], [0], [1], [0, 0, 1, 1], [], []>} : vector<2x32xf32>, vector<32x128xf32>, vector<2x128xf32> -> vector<2x128xf32>
    %7 = arith.addf %5, %6 : vector<2x128xf32>
    %8 = vector.extract_strided_slice %7 {offsets = [0, 0], sizes = [2, 96], strides = [1, 1]} : vector<2x128xf32> to vector<2x96xf32>
    %9 = arith.negf %8 : vector<2x96xf32>
    %10 = math.exp %9 : vector<2x96xf32>
    %cst_7 = arith.constant 1.000000e+00 : f32
    %11 = vector.broadcast %cst_7 : f32 to vector<2x96xf32>
    %12 = arith.addf %11, %10 : vector<2x96xf32>
    %13 = arith.divf %11, %12 : vector<2x96xf32>
    %14 = vector.extract_strided_slice %7 {offsets = [0, 96], sizes = [2, 32], strides = [1, 1]} : vector<2x128xf32> to vector<2x32xf32>
    %15 = math.tanh %14 : vector<2x32xf32>
    %16 = vector.extract_strided_slice %13 {offsets = [0, 0], sizes = [2, 32], strides = [1, 1]} : vector<2x96xf32> to vector<2x32xf32>
    %17 = vector.extract_strided_slice %13 {offsets = [0, 32], sizes = [2, 32], strides = [1, 1]} : vector<2x96xf32> to vector<2x32xf32>
    %18 = vector.extract_strided_slice %13 {offsets = [0, 64], sizes = [2, 32], strides = [1, 1]} : vector<2x96xf32> to vector<2x32xf32>
    %19 = arith.mulf %17, %2 : vector<2x32xf32>
    %20 = arith.mulf %16, %15 : vector<2x32xf32>
    %21 = arith.addf %19, %20 : vector<2x32xf32>
    %22 = math.tanh %21 : vector<2x32xf32>
    %23 = arith.mulf %18, %22 : vector<2x32xf32>
    %24 = vector.extract_strided_slice %23 {offsets = [0, 0], sizes = [2, 16], strides = [1, 1]} : vector<2x32xf32> to vector<2x16xf32>
    %25 = arith.index_cast %c0_i32 : i32 to index
    %c0_8 = arith.constant 0 : index
    %c0_9 = arith.constant 0 : index
    %26 = vector.load %arg5[%25, %c0_8, %c0_9] : memref<8x2x32xf32, #tpu.memory_space<vmem>>, vector<1x2x16xf32>
    %27 = vector.shape_cast %26 : vector<1x2x16xf32> to vector<2x16xf32>
    %28 = vector.shape_cast %24 : vector<2x16xf32> to vector<1x2x16xf32>
    tpu.vector_store %arg5[%25, %c0_8, %c0_9], %28 {strides = array<i32>} : memref<8x2x32xf32, #tpu.memory_space<vmem>>, vector<1x2x16xf32>,
    %29 = vector.extract_strided_slice %23 {offsets = [0, 16], sizes = [2, 16], strides = [1, 1]} : vector<2x32xf32> to vector<2x16xf32>
    %c7_i32 = arith.constant 7 : i32
    %30 = arith.subi %c7_i32, %c0_i32 : i32
    %31 = arith.index_cast %30 : i32 to index
    %c0_10 = arith.constant 0 : index
    %c16 = arith.constant 16 : index
    %32 = vector.load %arg5[%31, %c0_10, %c16] : memref<8x2x32xf32, #tpu.memory_space<vmem>>, vector<1x2x16xf32>
    %33 = vector.shape_cast %32 : vector<1x2x16xf32> to vector<2x16xf32>
    %34 = vector.shape_cast %29 : vector<2x16xf32> to vector<1x2x16xf32>
    tpu.vector_store %arg5[%31, %c0_10, %c16], %34 {strides = array<i32>} : memref<8x2x32xf32, #tpu.memory_space<vmem>>, vector<1x2x16xf32>,
    %c1_i32 = arith.constant 1 : i32
    %35 = arith.index_cast %c1_i32 : i32 to index
    %c0_11 = arith.constant 0 : index
    %c0_12 = arith.constant 0 : index
    %36 = vector.load %arg1[%35, %c0_11, %c0_12] : memref<8x2x128xf32, #tpu.memory_space<vmem>>, vector<1x2x128xf32>
    %37 = vector.shape_cast %36 : vector<1x2x128xf32> to vector<2x128xf32>
    %cst_13 = arith.constant dense<0.000000e+00> : vector<2x128xf32>
    %38 = tpu.matmul %23, %0, %cst_13 {dimension_numbers = #tpu.dot_dimension_numbers<[1], [0], [0], [1], [0, 0, 1, 1], [], []>} : vector<2x32xf32>, vector<32x128xf32>, vector<2x128xf32> -> vector<2x128xf32>
    %39 = arith.addf %37, %38 : vector<2x128xf32>
    %40 = vector.extract_strided_slice %39 {offsets = [0, 0], sizes = [2, 96], strides = [1, 1]} : vector<2x128xf32> to vector<2x96xf32>
    %41 = arith.negf %40 : vector<2x96xf32>
    %42 = math.exp %41 : vector<2x96xf32>
    %cst_14 = arith.constant 1.000000e+00 : f32
    %43 = vector.broadcast %cst_14 : f32 to vector<2x96xf32>
    %44 = arith.addf %43, %42 : vector<2x96xf32>
    %45 = arith.divf %43, %44 : vector<2x96xf32>
    %46 = vector.extract_strided_slice %39 {offsets = [0, 96], sizes = [2, 32], strides = [1, 1]} : vector<2x128xf32> to vector<2x32xf32>
    %47 = math.tanh %46 : vector<2x32xf32>
    %48 = vector.extract_strided_slice %45 {offsets = [0, 0], sizes = [2, 32], strides = [1, 1]} : vector<2x96xf32> to vector<2x32xf32>
    %49 = vector.extract_strided_slice %45 {offsets = [0, 32], sizes = [2, 32], strides = [1, 1]} : vector<2x96xf32> to vector<2x32xf32>
    %50 = vector.extract_strided_slice %45 {offsets = [0, 64], sizes = [2, 32], strides = [1, 1]} : vector<2x96xf32> to vector<2x32xf32>
    %51 = arith.mulf %49, %21 : vector<2x32xf32>
    %52 = arith.mulf %48, %47 : vector<2x32xf32>
    %53 = arith.addf %51, %52 : vector<2x32xf32>
    %54 = math.tanh %53 : vector<2x32xf32>
    %55 = arith.mulf %50, %54 : vector<2x32xf32>
    %56 = vector.extract_strided_slice %55 {offsets = [0, 0], sizes = [2, 16], strides = [1, 1]} : vector<2x32xf32> to vector<2x16xf32>
    %57 = arith.index_cast %c1_i32 : i32 to index
    %c0_15 = arith.constant 0 : index
    %c0_16 = arith.constant 0 : index
    %58 = vector.load %arg5[%57, %c0_15, %c0_16] : memref<8x2x32xf32, #tpu.memory_space<vmem>>, vector<1x2x16xf32>
    %59 = vector.shape_cast %58 : vector<1x2x16xf32> to vector<2x16xf32>
    %60 = vector.shape_cast %56 : vector<2x16xf32> to vector<1x2x16xf32>
    tpu.vector_store %arg5[%57, %c0_15, %c0_16], %60 {strides = array<i32>} : memref<8x2x32xf32, #tpu.memory_space<vmem>>, vector<1x2x16xf32>,
    %61 = vector.extract_strided_slice %55 {offsets = [0, 16], sizes = [2, 16], strides = [1, 1]} : vector<2x32xf32> to vector<2x16xf32>
    %c7_i32_17 = arith.constant 7 : i32
    %62 = arith.subi %c7_i32_17, %c1_i32 : i32
    %63 = arith.index_cast %62 : i32 to index
    %c0_18 = arith.constant 0 : index
    %c16_19 = arith.constant 16 : index
    %64 = vector.load %arg5[%63, %c0_18, %c16_19] : memref<8x2x32xf32, #tpu.memory_space<vmem>>, vector<1x2x16xf32>
    %65 = vector.shape_cast %64 : vector<1x2x16xf32> to vector<2x16xf32>
    %66 = vector.shape_cast %61 : vector<2x16xf32> to vector<1x2x16xf32>
    tpu.vector_store %arg5[%63, %c0_18, %c16_19], %66 {strides = array<i32>} : memref<8x2x32xf32, #tpu.memory_space<vmem>>, vector<1x2x16xf32>,
    %c2_i32 = arith.constant 2 : i32
    %67 = arith.index_cast %c2_i32 : i32 to index
    %c0_20 = arith.constant 0 : index
    %c0_21 = arith.constant 0 : index
    %68 = vector.load %arg1[%67, %c0_20, %c0_21] : memref<8x2x128xf32, #tpu.memory_space<vmem>>, vector<1x2x128xf32>
    %69 = vector.shape_cast %68 : vector<1x2x128xf32> to vector<2x128xf32>
    %cst_22 = arith.constant dense<0.000000e+00> : vector<2x128xf32>
    %70 = tpu.matmul %55, %0, %cst_22 {dimension_numbers = #tpu.dot_dimension_numbers<[1], [0], [0], [1], [0, 0, 1, 1], [], []>} : vector<2x32xf32>, vector<32x128xf32>, vector<2x128xf32> -> vector<2x128xf32>
    %71 = arith.addf %69, %70 : vector<2x128xf32>
    %72 = vector.extract_strided_slice %71 {offsets = [0, 0], sizes = [2, 96], strides = [1, 1]} : vector<2x128xf32> to vector<2x96xf32>
    %73 = arith.negf %72 : vector<2x96xf32>
    %74 = math.exp %73 : vector<2x96xf32>
    %cst_23 = arith.constant 1.000000e+00 : f32
    %75 = vector.broadcast %cst_23 : f32 to vector<2x96xf32>
    %76 = arith.addf %75, %74 : vector<2x96xf32>
    %77 = arith.divf %75, %76 : vector<2x96xf32>
    %78 = vector.extract_strided_slice %71 {offsets = [0, 96], sizes = [2, 32], strides = [1, 1]} : vector<2x128xf32> to vector<2x32xf32>
    %79 = math.tanh %78 : vector<2x32xf32>
    %80 = vector.extract_strided_slice %77 {offsets = [0, 0], sizes = [2, 32], strides = [1, 1]} : vector<2x96xf32> to vector<2x32xf32>
    %81 = vector.extract_strided_slice %77 {offsets = [0, 32], sizes = [2, 32], strides = [1, 1]} : vector<2x96xf32> to vector<2x32xf32>
    %82 = vector.extract_strided_slice %77 {offsets = [0, 64], sizes = [2, 32], strides = [1, 1]} : vector<2x96xf32> to vector<2x32xf32>
    %83 = arith.mulf %81, %53 : vector<2x32xf32>
    %84 = arith.mulf %80, %79 : vector<2x32xf32>
    %85 = arith.addf %83, %84 : vector<2x32xf32>
    %86 = math.tanh %85 : vector<2x32xf32>
    %87 = arith.mulf %82, %86 : vector<2x32xf32>
    %88 = vector.extract_strided_slice %87 {offsets = [0, 0], sizes = [2, 16], strides = [1, 1]} : vector<2x32xf32> to vector<2x16xf32>
    %89 = arith.index_cast %c2_i32 : i32 to index
    %c0_24 = arith.constant 0 : index
    %c0_25 = arith.constant 0 : index
    %90 = vector.load %arg5[%89, %c0_24, %c0_25] : memref<8x2x32xf32, #tpu.memory_space<vmem>>, vector<1x2x16xf32>
    %91 = vector.shape_cast %90 : vector<1x2x16xf32> to vector<2x16xf32>
    %92 = vector.shape_cast %88 : vector<2x16xf32> to vector<1x2x16xf32>
    tpu.vector_store %arg5[%89, %c0_24, %c0_25], %92 {strides = array<i32>} : memref<8x2x32xf32, #tpu.memory_space<vmem>>, vector<1x2x16xf32>,
    %93 = vector.extract_strided_slice %87 {offsets = [0, 16], sizes = [2, 16], strides = [1, 1]} : vector<2x32xf32> to vector<2x16xf32>
    %c7_i32_26 = arith.constant 7 : i32
    %94 = arith.subi %c7_i32_26, %c2_i32 : i32
    %95 = arith.index_cast %94 : i32 to index
    %c0_27 = arith.constant 0 : index
    %c16_28 = arith.constant 16 : index
    %96 = vector.load %arg5[%95, %c0_27, %c16_28] : memref<8x2x32xf32, #tpu.memory_space<vmem>>, vector<1x2x16xf32>
    %97 = vector.shape_cast %96 : vector<1x2x16xf32> to vector<2x16xf32>
    %98 = vector.shape_cast %93 : vector<2x16xf32> to vector<1x2x16xf32>
    tpu.vector_store %arg5[%95, %c0_27, %c16_28], %98 {strides = array<i32>} : memref<8x2x32xf32, #tpu.memory_space<vmem>>, vector<1x2x16xf32>,
    %c3_i32 = arith.constant 3 : i32
    %99 = arith.index_cast %c3_i32 : i32 to index
    %c0_29 = arith.constant 0 : index
    %c0_30 = arith.constant 0 : index
    %100 = vector.load %arg1[%99, %c0_29, %c0_30] : memref<8x2x128xf32, #tpu.memory_space<vmem>>, vector<1x2x128xf32>
    %101 = vector.shape_cast %100 : vector<1x2x128xf32> to vector<2x128xf32>
    %cst_31 = arith.constant dense<0.000000e+00> : vector<2x128xf32>
    %102 = tpu.matmul %87, %0, %cst_31 {dimension_numbers = #tpu.dot_dimension_numbers<[1], [0], [0], [1], [0, 0, 1, 1], [], []>} : vector<2x32xf32>, vector<32x128xf32>, vector<2x128xf32> -> vector<2x128xf32>
    %103 = arith.addf %101, %102 : vector<2x128xf32>
    %104 = vector.extract_strided_slice %103 {offsets = [0, 0], sizes = [2, 96], strides = [1, 1]} : vector<2x128xf32> to vector<2x96xf32>
    %105 = arith.negf %104 : vector<2x96xf32>
    %106 = math.exp %105 : vector<2x96xf32>
    %cst_32 = arith.constant 1.000000e+00 : f32
    %107 = vector.broadcast %cst_32 : f32 to vector<2x96xf32>
    %108 = arith.addf %107, %106 : vector<2x96xf32>
    %109 = arith.divf %107, %108 : vector<2x96xf32>
    %110 = vector.extract_strided_slice %103 {offsets = [0, 96], sizes = [2, 32], strides = [1, 1]} : vector<2x128xf32> to vector<2x32xf32>
    %111 = math.tanh %110 : vector<2x32xf32>
    %112 = vector.extract_strided_slice %109 {offsets = [0, 0], sizes = [2, 32], strides = [1, 1]} : vector<2x96xf32> to vector<2x32xf32>
    %113 = vector.extract_strided_slice %109 {offsets = [0, 32], sizes = [2, 32], strides = [1, 1]} : vector<2x96xf32> to vector<2x32xf32>
    %114 = vector.extract_strided_slice %109 {offsets = [0, 64], sizes = [2, 32], strides = [1, 1]} : vector<2x96xf32> to vector<2x32xf32>
    %115 = arith.mulf %113, %85 : vector<2x32xf32>
    %116 = arith.mulf %112, %111 : vector<2x32xf32>
    %117 = arith.addf %115, %116 : vector<2x32xf32>
    %118 = math.tanh %117 : vector<2x32xf32>
    %119 = arith.mulf %114, %118 : vector<2x32xf32>
    %120 = vector.extract_strided_slice %119 {offsets = [0, 0], sizes = [2, 16], strides = [1, 1]} : vector<2x32xf32> to vector<2x16xf32>
    %121 = arith.index_cast %c3_i32 : i32 to index
    %c0_33 = arith.constant 0 : index
    %c0_34 = arith.constant 0 : index
    %122 = vector.load %arg5[%121, %c0_33, %c0_34] : memref<8x2x32xf32, #tpu.memory_space<vmem>>, vector<1x2x16xf32>
    %123 = vector.shape_cast %122 : vector<1x2x16xf32> to vector<2x16xf32>
    %124 = vector.shape_cast %120 : vector<2x16xf32> to vector<1x2x16xf32>
    tpu.vector_store %arg5[%121, %c0_33, %c0_34], %124 {strides = array<i32>} : memref<8x2x32xf32, #tpu.memory_space<vmem>>, vector<1x2x16xf32>,
    %125 = vector.extract_strided_slice %119 {offsets = [0, 16], sizes = [2, 16], strides = [1, 1]} : vector<2x32xf32> to vector<2x16xf32>
    %c7_i32_35 = arith.constant 7 : i32
    %126 = arith.subi %c7_i32_35, %c3_i32 : i32
    %127 = arith.index_cast %126 : i32 to index
    %c0_36 = arith.constant 0 : index
    %c16_37 = arith.constant 16 : index
    %128 = vector.load %arg5[%127, %c0_36, %c16_37] : memref<8x2x32xf32, #tpu.memory_space<vmem>>, vector<1x2x16xf32>
    %129 = vector.shape_cast %128 : vector<1x2x16xf32> to vector<2x16xf32>
    %130 = vector.shape_cast %125 : vector<2x16xf32> to vector<1x2x16xf32>
    tpu.vector_store %arg5[%127, %c0_36, %c16_37], %130 {strides = array<i32>} : memref<8x2x32xf32, #tpu.memory_space<vmem>>, vector<1x2x16xf32>,
    %c4_i32 = arith.constant 4 : i32
    %131 = arith.index_cast %c4_i32 : i32 to index
    %c0_38 = arith.constant 0 : index
    %c0_39 = arith.constant 0 : index
    %132 = vector.load %arg1[%131, %c0_38, %c0_39] : memref<8x2x128xf32, #tpu.memory_space<vmem>>, vector<1x2x128xf32>
    %133 = vector.shape_cast %132 : vector<1x2x128xf32> to vector<2x128xf32>
    %cst_40 = arith.constant dense<0.000000e+00> : vector<2x128xf32>
    %134 = tpu.matmul %119, %0, %cst_40 {dimension_numbers = #tpu.dot_dimension_numbers<[1], [0], [0], [1], [0, 0, 1, 1], [], []>} : vector<2x32xf32>, vector<32x128xf32>, vector<2x128xf32> -> vector<2x128xf32>
    %135 = arith.addf %133, %134 : vector<2x128xf32>
    %136 = vector.extract_strided_slice %135 {offsets = [0, 0], sizes = [2, 96], strides = [1, 1]} : vector<2x128xf32> to vector<2x96xf32>
    %137 = arith.negf %136 : vector<2x96xf32>
    %138 = math.exp %137 : vector<2x96xf32>
    %cst_41 = arith.constant 1.000000e+00 : f32
    %139 = vector.broadcast %cst_41 : f32 to vector<2x96xf32>
    %140 = arith.addf %139, %138 : vector<2x96xf32>
    %141 = arith.divf %139, %140 : vector<2x96xf32>
    %142 = vector.extract_strided_slice %135 {offsets = [0, 96], sizes = [2, 32], strides = [1, 1]} : vector<2x128xf32> to vector<2x32xf32>
    %143 = math.tanh %142 : vector<2x32xf32>
    %144 = vector.extract_strided_slice %141 {offsets = [0, 0], sizes = [2, 32], strides = [1, 1]} : vector<2x96xf32> to vector<2x32xf32>
    %145 = vector.extract_strided_slice %141 {offsets = [0, 32], sizes = [2, 32], strides = [1, 1]} : vector<2x96xf32> to vector<2x32xf32>
    %146 = vector.extract_strided_slice %141 {offsets = [0, 64], sizes = [2, 32], strides = [1, 1]} : vector<2x96xf32> to vector<2x32xf32>
    %147 = arith.mulf %145, %117 : vector<2x32xf32>
    %148 = arith.mulf %144, %143 : vector<2x32xf32>
    %149 = arith.addf %147, %148 : vector<2x32xf32>
    %150 = math.tanh %149 : vector<2x32xf32>
    %151 = arith.mulf %146, %150 : vector<2x32xf32>
    %152 = vector.extract_strided_slice %151 {offsets = [0, 0], sizes = [2, 16], strides = [1, 1]} : vector<2x32xf32> to vector<2x16xf32>
    %153 = arith.index_cast %c4_i32 : i32 to index
    %c0_42 = arith.constant 0 : index
    %c0_43 = arith.constant 0 : index
    %154 = vector.load %arg5[%153, %c0_42, %c0_43] : memref<8x2x32xf32, #tpu.memory_space<vmem>>, vector<1x2x16xf32>
    %155 = vector.shape_cast %154 : vector<1x2x16xf32> to vector<2x16xf32>
    %156 = vector.shape_cast %152 : vector<2x16xf32> to vector<1x2x16xf32>
    tpu.vector_store %arg5[%153, %c0_42, %c0_43], %156 {strides = array<i32>} : memref<8x2x32xf32, #tpu.memory_space<vmem>>, vector<1x2x16xf32>,
    %157 = vector.extract_strided_slice %151 {offsets = [0, 16], sizes = [2, 16], strides = [1, 1]} : vector<2x32xf32> to vector<2x16xf32>
    %c7_i32_44 = arith.constant 7 : i32
    %158 = arith.subi %c7_i32_44, %c4_i32 : i32
    %159 = arith.index_cast %158 : i32 to index
    %c0_45 = arith.constant 0 : index
    %c16_46 = arith.constant 16 : index
    %160 = vector.load %arg5[%159, %c0_45, %c16_46] : memref<8x2x32xf32, #tpu.memory_space<vmem>>, vector<1x2x16xf32>
    %161 = vector.shape_cast %160 : vector<1x2x16xf32> to vector<2x16xf32>
    %162 = vector.shape_cast %157 : vector<2x16xf32> to vector<1x2x16xf32>
    tpu.vector_store %arg5[%159, %c0_45, %c16_46], %162 {strides = array<i32>} : memref<8x2x32xf32, #tpu.memory_space<vmem>>, vector<1x2x16xf32>,
    %c5_i32 = arith.constant 5 : i32
    %163 = arith.index_cast %c5_i32 : i32 to index
    %c0_47 = arith.constant 0 : index
    %c0_48 = arith.constant 0 : index
    %164 = vector.load %arg1[%163, %c0_47, %c0_48] : memref<8x2x128xf32, #tpu.memory_space<vmem>>, vector<1x2x128xf32>
    %165 = vector.shape_cast %164 : vector<1x2x128xf32> to vector<2x128xf32>
    %cst_49 = arith.constant dense<0.000000e+00> : vector<2x128xf32>
    %166 = tpu.matmul %151, %0, %cst_49 {dimension_numbers = #tpu.dot_dimension_numbers<[1], [0], [0], [1], [0, 0, 1, 1], [], []>} : vector<2x32xf32>, vector<32x128xf32>, vector<2x128xf32> -> vector<2x128xf32>
    %167 = arith.addf %165, %166 : vector<2x128xf32>
    %168 = vector.extract_strided_slice %167 {offsets = [0, 0], sizes = [2, 96], strides = [1, 1]} : vector<2x128xf32> to vector<2x96xf32>
    %169 = arith.negf %168 : vector<2x96xf32>
    %170 = math.exp %169 : vector<2x96xf32>
    %cst_50 = arith.constant 1.000000e+00 : f32
    %171 = vector.broadcast %cst_50 : f32 to vector<2x96xf32>
    %172 = arith.addf %171, %170 : vector<2x96xf32>
    %173 = arith.divf %171, %172 : vector<2x96xf32>
    %174 = vector.extract_strided_slice %167 {offsets = [0, 96], sizes = [2, 32], strides = [1, 1]} : vector<2x128xf32> to vector<2x32xf32>
    %175 = math.tanh %174 : vector<2x32xf32>
    %176 = vector.extract_strided_slice %173 {offsets = [0, 0], sizes = [2, 32], strides = [1, 1]} : vector<2x96xf32> to vector<2x32xf32>
    %177 = vector.extract_strided_slice %173 {offsets = [0, 32], sizes = [2, 32], strides = [1, 1]} : vector<2x96xf32> to vector<2x32xf32>
    %178 = vector.extract_strided_slice %173 {offsets = [0, 64], sizes = [2, 32], strides = [1, 1]} : vector<2x96xf32> to vector<2x32xf32>
    %179 = arith.mulf %177, %149 : vector<2x32xf32>
    %180 = arith.mulf %176, %175 : vector<2x32xf32>
    %181 = arith.addf %179, %180 : vector<2x32xf32>
    %182 = math.tanh %181 : vector<2x32xf32>
    %183 = arith.mulf %178, %182 : vector<2x32xf32>
    %184 = vector.extract_strided_slice %183 {offsets = [0, 0], sizes = [2, 16], strides = [1, 1]} : vector<2x32xf32> to vector<2x16xf32>
    %185 = arith.index_cast %c5_i32 : i32 to index
    %c0_51 = arith.constant 0 : index
    %c0_52 = arith.constant 0 : index
    %186 = vector.load %arg5[%185, %c0_51, %c0_52] : memref<8x2x32xf32, #tpu.memory_space<vmem>>, vector<1x2x16xf32>
    %187 = vector.shape_cast %186 : vector<1x2x16xf32> to vector<2x16xf32>
    %188 = vector.shape_cast %184 : vector<2x16xf32> to vector<1x2x16xf32>
    tpu.vector_store %arg5[%185, %c0_51, %c0_52], %188 {strides = array<i32>} : memref<8x2x32xf32, #tpu.memory_space<vmem>>, vector<1x2x16xf32>,
    %189 = vector.extract_strided_slice %183 {offsets = [0, 16], sizes = [2, 16], strides = [1, 1]} : vector<2x32xf32> to vector<2x16xf32>
    %c7_i32_53 = arith.constant 7 : i32
    %190 = arith.subi %c7_i32_53, %c5_i32 : i32
    %191 = arith.index_cast %190 : i32 to index
    %c0_54 = arith.constant 0 : index
    %c16_55 = arith.constant 16 : index
    %192 = vector.load %arg5[%191, %c0_54, %c16_55] : memref<8x2x32xf32, #tpu.memory_space<vmem>>, vector<1x2x16xf32>
    %193 = vector.shape_cast %192 : vector<1x2x16xf32> to vector<2x16xf32>
    %194 = vector.shape_cast %189 : vector<2x16xf32> to vector<1x2x16xf32>
    tpu.vector_store %arg5[%191, %c0_54, %c16_55], %194 {strides = array<i32>} : memref<8x2x32xf32, #tpu.memory_space<vmem>>, vector<1x2x16xf32>,
    %c6_i32 = arith.constant 6 : i32
    %195 = arith.index_cast %c6_i32 : i32 to index
    %c0_56 = arith.constant 0 : index
    %c0_57 = arith.constant 0 : index
    %196 = vector.load %arg1[%195, %c0_56, %c0_57] : memref<8x2x128xf32, #tpu.memory_space<vmem>>, vector<1x2x128xf32>
    %197 = vector.shape_cast %196 : vector<1x2x128xf32> to vector<2x128xf32>
    %cst_58 = arith.constant dense<0.000000e+00> : vector<2x128xf32>
    %198 = tpu.matmul %183, %0, %cst_58 {dimension_numbers = #tpu.dot_dimension_numbers<[1], [0], [0], [1], [0, 0, 1, 1], [], []>} : vector<2x32xf32>, vector<32x128xf32>, vector<2x128xf32> -> vector<2x128xf32>
    %199 = arith.addf %197, %198 : vector<2x128xf32>
    %200 = vector.extract_strided_slice %199 {offsets = [0, 0], sizes = [2, 96], strides = [1, 1]} : vector<2x128xf32> to vector<2x96xf32>
    %201 = arith.negf %200 : vector<2x96xf32>
    %202 = math.exp %201 : vector<2x96xf32>
    %cst_59 = arith.constant 1.000000e+00 : f32
    %203 = vector.broadcast %cst_59 : f32 to vector<2x96xf32>
    %204 = arith.addf %203, %202 : vector<2x96xf32>
    %205 = arith.divf %203, %204 : vector<2x96xf32>
    %206 = vector.extract_strided_slice %199 {offsets = [0, 96], sizes = [2, 32], strides = [1, 1]} : vector<2x128xf32> to vector<2x32xf32>
    %207 = math.tanh %206 : vector<2x32xf32>
    %208 = vector.extract_strided_slice %205 {offsets = [0, 0], sizes = [2, 32], strides = [1, 1]} : vector<2x96xf32> to vector<2x32xf32>
    %209 = vector.extract_strided_slice %205 {offsets = [0, 32], sizes = [2, 32], strides = [1, 1]} : vector<2x96xf32> to vector<2x32xf32>
    %210 = vector.extract_strided_slice %205 {offsets = [0, 64], sizes = [2, 32], strides = [1, 1]} : vector<2x96xf32> to vector<2x32xf32>
    %211 = arith.mulf %209, %181 : vector<2x32xf32>
    %212 = arith.mulf %208, %207 : vector<2x32xf32>
    %213 = arith.addf %211, %212 : vector<2x32xf32>
    %214 = math.tanh %213 : vector<2x32xf32>
    %215 = arith.mulf %210, %214 : vector<2x32xf32>
    %216 = vector.extract_strided_slice %215 {offsets = [0, 0], sizes = [2, 16], strides = [1, 1]} : vector<2x32xf32> to vector<2x16xf32>
    %217 = arith.index_cast %c6_i32 : i32 to index
    %c0_60 = arith.constant 0 : index
    %c0_61 = arith.constant 0 : index
    %218 = vector.load %arg5[%217, %c0_60, %c0_61] : memref<8x2x32xf32, #tpu.memory_space<vmem>>, vector<1x2x16xf32>
    %219 = vector.shape_cast %218 : vector<1x2x16xf32> to vector<2x16xf32>
    %220 = vector.shape_cast %216 : vector<2x16xf32> to vector<1x2x16xf32>
    tpu.vector_store %arg5[%217, %c0_60, %c0_61], %220 {strides = array<i32>} : memref<8x2x32xf32, #tpu.memory_space<vmem>>, vector<1x2x16xf32>,
    %221 = vector.extract_strided_slice %215 {offsets = [0, 16], sizes = [2, 16], strides = [1, 1]} : vector<2x32xf32> to vector<2x16xf32>
    %c7_i32_62 = arith.constant 7 : i32
    %222 = arith.subi %c7_i32_62, %c6_i32 : i32
    %223 = arith.index_cast %222 : i32 to index
    %c0_63 = arith.constant 0 : index
    %c16_64 = arith.constant 16 : index
    %224 = vector.load %arg5[%223, %c0_63, %c16_64] : memref<8x2x32xf32, #tpu.memory_space<vmem>>, vector<1x2x16xf32>
    %225 = vector.shape_cast %224 : vector<1x2x16xf32> to vector<2x16xf32>
    %226 = vector.shape_cast %221 : vector<2x16xf32> to vector<1x2x16xf32>
    tpu.vector_store %arg5[%223, %c0_63, %c16_64], %226 {strides = array<i32>} : memref<8x2x32xf32, #tpu.memory_space<vmem>>, vector<1x2x16xf32>,
    %c7_i32_65 = arith.constant 7 : i32
    %227 = arith.index_cast %c7_i32_65 : i32 to index
    %c0_66 = arith.constant 0 : index
    %c0_67 = arith.constant 0 : index
    %228 = vector.load %arg1[%227, %c0_66, %c0_67] : memref<8x2x128xf32, #tpu.memory_space<vmem>>, vector<1x2x128xf32>
    %229 = vector.shape_cast %228 : vector<1x2x128xf32> to vector<2x128xf32>
    %cst_68 = arith.constant dense<0.000000e+00> : vector<2x128xf32>
    %230 = tpu.matmul %215, %0, %cst_68 {dimension_numbers = #tpu.dot_dimension_numbers<[1], [0], [0], [1], [0, 0, 1, 1], [], []>} : vector<2x32xf32>, vector<32x128xf32>, vector<2x128xf32> -> vector<2x128xf32>
    %231 = arith.addf %229, %230 : vector<2x128xf32>
    %232 = vector.extract_strided_slice %231 {offsets = [0, 0], sizes = [2, 96], strides = [1, 1]} : vector<2x128xf32> to vector<2x96xf32>
    %233 = arith.negf %232 : vector<2x96xf32>
    %234 = math.exp %233 : vector<2x96xf32>
    %cst_69 = arith.constant 1.000000e+00 : f32
    %235 = vector.broadcast %cst_69 : f32 to vector<2x96xf32>
    %236 = arith.addf %235, %234 : vector<2x96xf32>
    %237 = arith.divf %235, %236 : vector<2x96xf32>
    %238 = vector.extract_strided_slice %231 {offsets = [0, 96], sizes = [2, 32], strides = [1, 1]} : vector<2x128xf32> to vector<2x32xf32>
    %239 = math.tanh %238 : vector<2x32xf32>
    %240 = vector.extract_strided_slice %237 {offsets = [0, 0], sizes = [2, 32], strides = [1, 1]} : vector<2x96xf32> to vector<2x32xf32>
    %241 = vector.extract_strided_slice %237 {offsets = [0, 32], sizes = [2, 32], strides = [1, 1]} : vector<2x96xf32> to vector<2x32xf32>
    %242 = vector.extract_strided_slice %237 {offsets = [0, 64], sizes = [2, 32], strides = [1, 1]} : vector<2x96xf32> to vector<2x32xf32>
    %243 = arith.mulf %241, %213 : vector<2x32xf32>
    %244 = arith.mulf %240, %239 : vector<2x32xf32>
    %245 = arith.addf %243, %244 : vector<2x32xf32>
    %246 = math.tanh %245 : vector<2x32xf32>
    %247 = arith.mulf %242, %246 : vector<2x32xf32>
    %248 = vector.extract_strided_slice %247 {offsets = [0, 0], sizes = [2, 16], strides = [1, 1]} : vector<2x32xf32> to vector<2x16xf32>
    %249 = arith.index_cast %c7_i32_65 : i32 to index
    %c0_70 = arith.constant 0 : index
    %c0_71 = arith.constant 0 : index
    %250 = vector.load %arg5[%249, %c0_70, %c0_71] : memref<8x2x32xf32, #tpu.memory_space<vmem>>, vector<1x2x16xf32>
    %251 = vector.shape_cast %250 : vector<1x2x16xf32> to vector<2x16xf32>
    %252 = vector.shape_cast %248 : vector<2x16xf32> to vector<1x2x16xf32>
    tpu.vector_store %arg5[%249, %c0_70, %c0_71], %252 {strides = array<i32>} : memref<8x2x32xf32, #tpu.memory_space<vmem>>, vector<1x2x16xf32>,
    %253 = vector.extract_strided_slice %247 {offsets = [0, 16], sizes = [2, 16], strides = [1, 1]} : vector<2x32xf32> to vector<2x16xf32>
    %c7_i32_72 = arith.constant 7 : i32
    %254 = arith.subi %c7_i32_72, %c7_i32_65 : i32
    %255 = arith.index_cast %254 : i32 to index
    %c0_73 = arith.constant 0 : index
    %c16_74 = arith.constant 16 : index
    %256 = vector.load %arg5[%255, %c0_73, %c16_74] : memref<8x2x32xf32, #tpu.memory_space<vmem>>, vector<1x2x16xf32>
    %257 = vector.shape_cast %256 : vector<1x2x16xf32> to vector<2x16xf32>
    %258 = vector.shape_cast %253 : vector<2x16xf32> to vector<1x2x16xf32>
    tpu.vector_store %arg5[%255, %c0_73, %c16_74], %258 {strides = array<i32>} : memref<8x2x32xf32, #tpu.memory_space<vmem>>, vector<1x2x16xf32>,
    %c8_i32 = arith.constant 8 : i32
    return
  }
  func.func @transform_0(%arg0: i32) -> (i32, i32, i32) {
    %c0_i32 = arith.constant 0 : i32
    %c0_i32_0 = arith.constant 0 : i32
    %c0_i32_1 = arith.constant 0 : i32
    %c0_i32_2 = arith.constant 0 : i32
    return %c0_i32, %c0_i32_0, %c0_i32_1 : i32, i32, i32
  }
  func.func @transform_1(%arg0: i32) -> (i32, i32) {
    %c0_i32 = arith.constant 0 : i32
    %c0_i32_0 = arith.constant 0 : i32
    %c0_i32_1 = arith.constant 0 : i32
    return %c0_i32, %c0_i32_0 : i32, i32
  }
  func.func @transform_2(%arg0: i32) -> (i32, i32) {
    %c0_i32 = arith.constant 0 : i32
    %c0_i32_0 = arith.constant 0 : i32
    %c0_i32_1 = arith.constant 0 : i32
    return %c0_i32, %c0_i32_0 : i32, i32
  }
  func.func @transform_3(%arg0: i32) -> (i32, i32) {
    %c0_i32 = arith.constant 0 : i32
    %c0_i32_0 = arith.constant 0 : i32
    %c0_i32_1 = arith.constant 0 : i32
    return %c0_i32, %c0_i32_0 : i32, i32
  }
  func.func @transform_4(%arg0: i32) -> (i32, i32, i32) {
    %c0_i32 = arith.constant 0 : i32
    %c0_i32_0 = arith.constant 0 : i32
    %c0_i32_1 = arith.constant 0 : i32
    %c0_i32_2 = arith.constant 0 : i32
    return %c0_i32, %c0_i32_0, %c0_i32_1 : i32, i32, i32
  }
}

</mosaic_0001>

<bundles_post_ra>
// kernel: bilstm_module_forward.2
= control target key start
LH: loop header
LB: loop body
LE: loop exit
PB: predicated region body
PF: predicated region fallthrough
CT: control target
= control target key end

     0   :  { %v1114_v0 = vmov 0.0   ;;  %vm1115_vm0 = vmmov 0   ;;  %vm24_vm1 = vcmask 261120   ;;  %s1116_s25 = smov 32   ;;  %vm131_vm2 = vcmask 123904   ;;  %s1378_s1 = inlined_call_operand.vmem [shape: f32[32,128], index: 1, kind: input, shape index: {}]   ;;  %s1379_s2 = inlined_call_operand.vmem [shape: f32[2,32], index: 2, kind: input, shape index: {}]   ;;  %s1380_s0 = inlined_call_operand.vmem [shape: f32[8,2,128], index: 0, kind: input, shape index: {}]   ;;  %s1381_s3 = inlined_call_operand.vmem [shape: f32[2,32], index: 3, kind: input, shape index: {}]   ;;  %s1382_s4 = inlined_call_operand.vmem [shape: f32[8,2,32], index: 4, kind: output, shape index: {}]  }
   0x1   :  { %958 = vmatprep.subr.mxu0 %v1114_v0  ;;  %v1147_v1 = vld [vmem:[%s1378_s1 + $0x18] sm:$0xff]  ;;  %v1152_v2 = vld [vmem:[%s1378_s1 + $0x10] sm:$0xff]  ;;  %966 = vmatprep.mubr.msk.f32.mxu0 %vm1115_vm0, %v1114_v0  ;;  %v1162_v3 = vld [vmem:[%s1378_s1 + $0x8] sm:$0xff]  ;;  %vm134_vm3 = vcmask 255104  }
   0x2   :  { %959 = vmatpush3.msra.mxu0 %v1147_v1  ;;  %969 = vmatprep.subr.mxu1 %v1114_v0  ;;  %v1171_v4 = vld [vmem:[%s1378_s1] sm:$0xff] }
   0x3   :  { %960 = vmatprep.subr.mxu0 %v1114_v0  ;;  %970 = vmatpush3.msra.mxu1 %v1147_v1  ;;  %v21_v5 = vld [vmem:[%s1379_s2] sm:$0x3]  ;;  %v884_v26 = vld [vmem:[%s1380_s0 + $0x2] sm:$0x3]  ;;  %v889_v44 = vld [vmem:[%s1380_s0 + $0x4] sm:$0x3] }
   0x4   :  { %961 = vmatpush3.msra.mxu0 %v1152_v2  ;;  %971 = vmatprep.subr.mxu1 %v1114_v0  ;;  %v23_v6 = vld [vmem:[%s1380_s0] sm:$0x3]  ;;  %v894_v62 = vld [vmem:[%s1380_s0 + $0x6] sm:$0x3] }
   0x5   :  { %962 = vmatprep.subr.mxu0 %v1114_v0  ;;  %972 = vmatpush3.msra.mxu1 %v1152_v2  ;;  %v22_v11 = vld [vmem:[%s1381_s3] sm:$0x3]  ;;  %s1117_s3 = smov 64  }
   0x6   :  { %963 = vmatpush3.msra.mxu0 %v1162_v3  ;;  %973 = vmatprep.subr.mxu1 %v1114_v0 }
   0x7   :  { %964 = vmatprep.subr.mxu0 %v1114_v0  ;;  %974 = vmatpush3.msra.mxu1 %v1162_v3 }
   0x8   :  { %965 = vmatpush3.msra.mxu0 %v1171_v4  ;;  %975 = vmatprep.subr.mxu1 %v1114_v0 }
   0x9   :  { %967 = vmatmul.mubr.msk.f32.vlgmr.msra.gmra.mxu0 %vm24_vm1, %v21_v5  ;;  %976 = vmatpush3.msra.mxu1 %v1171_v4 }
   0xa   :  { %977 = vmatprep.mubr.msk.f32.mxu1 %vm1115_vm0, %v1114_v0  ;;  %980 = vmatprep.subr.mxu0 %v1114_v0 }
   0xb   :  { %981 = vmatpush3.msra.mxu0 %v1147_v1  ;;  %988 = vmatprep.mubr.msk.f32.mxu0 %vm1115_vm0, %v1114_v0 }
   0xc   :  { %982 = vmatprep.subr.mxu0 %v1114_v0  ;;  %991 = vmatprep.subr.mxu1 %v1114_v0 }
   0xd   :  { %983 = vmatpush3.msra.mxu0 %v1152_v2 }
   0xe   :  { %984 = vmatprep.subr.mxu0 %v1114_v0 }
   0xf   :  { %985 = vmatpush3.msra.mxu0 %v1162_v3 }
  0x10   :  { %986 = vmatprep.subr.mxu0 %v1114_v0 }
  0x11   :  { %987 = vmatpush3.msra.mxu0 %v1171_v4 }
  0x12   :  { %1002 = vmatprep.subr.mxu0 %v1114_v0 }
  0xc9   :  { %v94_v7 = vpop.f32.mrf.mxu0 }
  0xca   :  { %v98_v8 = vadd.f32 %v94_v7, %v23_v6 }
  0xcb   :  { %v968_v9 = vpop.f32.mrf.mxu0 }
  0xcc   :  { %1050 = vtanh.f32 %v98_v8  ;;  %v882_v12 = vmul.f32 -1.442695, %v98_v8 }
  0xce   :  { %1052 = vpow2.f32 %v882_v12 }
  0xd9   :  { %v1051_v10 = vpop.eup %1050 }
  0xda   :  { %112 = vrot.lane.b32.xlu0 %v1051_v10, %s1116_s25 }
  0xdb   :  { %v1053_v13 = vpop.eup %1052 }
  0xdc   :  { %v102_v14 = vadd.f32 1.0, %v1053_v13 }
  0xde   :  { %107 = vrot.lane.b32.xlu0 %v22_v11, %s1116_s25  ;;  %1054 = vrcp.f32 %v102_v14 }
  0xeb   :  { %v1055_v15 = vpop.eup %1054 }
 0x14c   :  { %v113_v16 = vpop.permute.xlu0 %112 }
 0x14d   :  { %v115_v17 = vmul.f32 %v1055_v15, %v113_v16 }
 0x14f   :  { %117 = vrot.lane.b32.xlu1 %v115_v17, %s1116_s25 }
 0x150   :  { %v108_v18 = vpop.permute.xlu0 %107 }
 0x151   :  { %v110_v19 = vmul.f32 %v1055_v15, %v108_v18 }
 0x1c1   :  { %v118_v20 = vpop.permute.xlu1 %117 }
 0x1c2   :  { %v120_v21 = vadd.f32 %v118_v20, %v110_v19 }
 0x1c4   :  { %1056 = vtanh.f32 %v120_v21 }
 0x1d1   :  { %v1057_v22 = vpop.eup %1056 }
 0x1d2   :  { %123 = vrot.lane.b32.xlu1 %v1057_v22, %s1116_s25 }
 0x244   :  { %v124_v23 = vpop.permute.xlu1 %123 }
 0x245   :  { %v126_v24 = vmul.f32 %v1055_v15, %v124_v23 }
 0x247   :  { %128 = vrot.lane.b32.xlu0 %v126_v24, %s1117_s3 }
 0x2b9   :  { %v129_v25 = vpop.permute.xlu0 %128 }
 0x2ba   :  { %132 = vst.msk [vmem:[%s1382_s4] sm:$0x3] %vm131_vm2, %v129_v25  ;;  %978 = vmatmul.mubr.msk.f32.vlgmr.msra.gmra.mxu1 %vm24_vm1, %v129_v25 }
 0x2bb   :  { %883 = vst.msk [vmem:[%s1382_s4 + $0xe] sm:$0x3] %vm134_vm3, %v129_v25  ;;  %992 = vmatpush3.msra.mxu1 %v1147_v1  ;;  %999 = vmatprep.mubr.msk.f32.mxu1 %vm1115_vm0, %v1114_v0 }
 0x2bc   :  { %993 = vmatprep.subr.mxu1 %v1114_v0 }
 0x2bd   :  { %994 = vmatpush3.msra.mxu1 %v1152_v2 }
 0x2be   :  { %995 = vmatprep.subr.mxu1 %v1114_v0 }
 0x2bf   :  { %996 = vmatpush3.msra.mxu1 %v1162_v3 }
 0x2c0   :  { %997 = vmatprep.subr.mxu1 %v1114_v0 }
 0x2c1   :  { %998 = vmatpush3.msra.mxu1 %v1171_v4 }
 0x2c2   :  { %1013 = vmatprep.subr.mxu1 %v1114_v0 }
 0x37a   :  { %v206_v27 = vpop.f32.mrf.mxu1 }
 0x37b   :  { %v210_v28 = vadd.f32 %v884_v26, %v206_v27 }
 0x37c   :  { %v979_v29 = vpop.f32.mrf.mxu1 }
 0x37d   :  { %1058 = vtanh.f32 %v210_v28  ;;  %v886_v31 = vmul.f32 -1.442695, %v210_v28 }
 0x37f   :  { %1060 = vpow2.f32 %v886_v31 }
 0x38a   :  { %v1059_v30 = vpop.eup %1058 }
 0x38b   :  { %220 = vrot.lane.b32.xlu1 %v1059_v30, %s1116_s25 }
 0x38c   :  { %v1061_v32 = vpop.eup %1060 }
 0x38d   :  { %v214_v33 = vadd.f32 1.0, %v1061_v32 }
 0x38f   :  { %1062 = vrcp.f32 %v214_v33 }
 0x39c   :  { %v1063_v34 = vpop.eup %1062 }
 0x39d   :  { %v218_v37 = vmul.f32 %v1063_v34, %v120_v21  ;;  %v899_v21 = vld [vmem:[%s1380_s0 + $0x8] sm:$0x3] }
 0x3fd   :  { %v221_v35 = vpop.permute.xlu1 %220 }
 0x3fe   :  { %v223_v36 = vmul.f32 %v1063_v34, %v221_v35 }
 0x400   :  { %225 = vrot.lane.b32.xlu0 %v223_v36, %s1116_s25 }
 0x472   :  { %v226_v38 = vpop.permute.xlu0 %225 }
 0x473   :  { %v228_v39 = vadd.f32 %v226_v38, %v218_v37 }
 0x475   :  { %1064 = vtanh.f32 %v228_v39 }
 0x482   :  { %v1065_v40 = vpop.eup %1064 }
 0x483   :  { %231 = vrot.lane.b32.xlu1 %v1065_v40, %s1116_s25 }
 0x4f5   :  { %v232_v41 = vpop.permute.xlu1 %231 }
 0x4f6   :  { %v234_v42 = vmul.f32 %v1063_v34, %v232_v41 }
 0x4f8   :  { %236 = vrot.lane.b32.xlu0 %v234_v42, %s1117_s3 }
 0x56a   :  { %v237_v43 = vpop.permute.xlu0 %236 }
 0x56b   :  { %887 = vst.msk [vmem:[%s1382_s4 + $0x2] sm:$0x3] %vm131_vm2, %v237_v43  ;;  %989 = vmatmul.mubr.msk.f32.vlgmr.msra.gmra.mxu0 %vm24_vm1, %v237_v43 }
 0x56c   :  { %888 = vst.msk [vmem:[%s1382_s4 + $0xc] sm:$0x3] %vm134_vm3, %v237_v43  ;;  %1003 = vmatpush3.msra.mxu0 %v1147_v1  ;;  %1010 = vmatprep.mubr.msk.f32.mxu0 %vm1115_vm0, %v1114_v0 }
 0x56d   :  { %1004 = vmatprep.subr.mxu0 %v1114_v0 }
 0x56e   :  { %1005 = vmatpush3.msra.mxu0 %v1152_v2 }
 0x56f   :  { %1006 = vmatprep.subr.mxu0 %v1114_v0 }
 0x570   :  { %1007 = vmatpush3.msra.mxu0 %v1162_v3 }
 0x571   :  { %1008 = vmatprep.subr.mxu0 %v1114_v0 }
 0x572   :  { %1009 = vmatpush3.msra.mxu0 %v1171_v4 }
 0x573   :  { %1024 = vmatprep.subr.mxu0 %v1114_v0 }
 0x62b   :  { %v313_v45 = vpop.f32.mrf.mxu0 }
 0x62c   :  { %v317_v46 = vadd.f32 %v889_v44, %v313_v45 }
 0x62d   :  { %v990_v47 = vpop.f32.mrf.mxu0 }
 0x62e   :  { %1066 = vtanh.f32 %v317_v46  ;;  %v891_v49 = vmul.f32 -1.442695, %v317_v46 }
 0x630   :  { %1068 = vpow2.f32 %v891_v49 }
 0x63b   :  { %v1067_v48 = vpop.eup %1066 }
 0x63c   :  { %327 = vrot.lane.b32.xlu1 %v1067_v48, %s1116_s25 }
 0x63d   :  { %v1069_v50 = vpop.eup %1068 }
 0x63e   :  { %v321_v51 = vadd.f32 1.0, %v1069_v50 }
 0x640   :  { %1070 = vrcp.f32 %v321_v51 }
 0x64d   :  { %v1071_v52 = vpop.eup %1070 }
 0x64e   :  { %v325_v55 = vmul.f32 %v1071_v52, %v228_v39  ;;  %v904_v39 = vld [vmem:[%s1380_s0 + $0xa] sm:$0x3] }
 0x6ae   :  { %v328_v53 = vpop.permute.xlu1 %327 }
 0x6af   :  { %v330_v54 = vmul.f32 %v1071_v52, %v328_v53 }
 0x6b1   :  { %332 = vrot.lane.b32.xlu0 %v330_v54, %s1116_s25 }
 0x723   :  { %v333_v56 = vpop.permute.xlu0 %332 }
 0x724   :  { %v335_v57 = vadd.f32 %v333_v56, %v325_v55 }
 0x726   :  { %1072 = vtanh.f32 %v335_v57 }
 0x733   :  { %v1073_v58 = vpop.eup %1072 }
 0x734   :  { %338 = vrot.lane.b32.xlu1 %v1073_v58, %s1116_s25 }
 0x7a6   :  { %v339_v59 = vpop.permute.xlu1 %338 }
 0x7a7   :  { %v341_v60 = vmul.f32 %v1071_v52, %v339_v59  ;;  %v909_v52 = vld [vmem:[%s1380_s0 + $0xc] sm:$0x3] }
 0x7a9   :  { %343 = vrot.lane.b32.xlu0 %v341_v60, %s1117_s3 }
 0x81b   :  { %v344_v61 = vpop.permute.xlu0 %343 }
 0x81c   :  { %892 = vst.msk [vmem:[%s1382_s4 + $0x4] sm:$0x3] %vm131_vm2, %v344_v61  ;;  %1000 = vmatmul.mubr.msk.f32.vlgmr.msra.gmra.mxu1 %vm24_vm1, %v344_v61 }
 0x81d   :  { %893 = vst.msk [vmem:[%s1382_s4 + $0xa] sm:$0x3] %vm134_vm3, %v344_v61  ;;  %1014 = vmatpush3.msra.mxu1 %v1147_v1  ;;  %1021 = vmatprep.mubr.msk.f32.mxu1 %vm1115_vm0, %v1114_v0 }
 0x81e   :  { %1015 = vmatprep.subr.mxu1 %v1114_v0 }
 0x81f   :  { %1016 = vmatpush3.msra.mxu1 %v1152_v2 }
 0x820   :  { %1017 = vmatprep.subr.mxu1 %v1114_v0 }
 0x821   :  { %1018 = vmatpush3.msra.mxu1 %v1162_v3 }
 0x822   :  { %1019 = vmatprep.subr.mxu1 %v1114_v0 }
 0x823   :  { %1020 = vmatpush3.msra.mxu1 %v1171_v4 }
 0x824   :  { %1035 = vmatprep.subr.mxu1 %v1114_v0 }
 0x8dc   :  { %v420_v63 = vpop.f32.mrf.mxu1 }
 0x8dd   :  { %v424_v5 = vadd.f32 %v894_v62, %v420_v63 }
 0x8de   :  { %v1001_v6 = vpop.f32.mrf.mxu1 }
 0x8df   :  { %1074 = vtanh.f32 %v424_v5  ;;  %v896_v8 = vmul.f32 -1.442695, %v424_v5 }
 0x8e1   :  { %1076 = vpow2.f32 %v896_v8 }
 0x8ec   :  { %v1075_v7 = vpop.eup %1074 }
 0x8ed   :  { %434 = vrot.lane.b32.xlu1 %v1075_v7, %s1116_s25 }
 0x8ee   :  { %v1077_v9 = vpop.eup %1076 }
 0x8ef   :  { %v428_v10 = vadd.f32 1.0, %v1077_v9 }
 0x8f1   :  { %1078 = vrcp.f32 %v428_v10 }
 0x8fe   :  { %v1079_v11 = vpop.eup %1078 }
 0x8ff   :  { %v432_v14 = vmul.f32 %v1079_v11, %v335_v57 }
 0x95f   :  { %v435_v12 = vpop.permute.xlu1 %434 }
 0x960   :  { %v437_v13 = vmul.f32 %v1079_v11, %v435_v12 }
 0x962   :  { %439 = vrot.lane.b32.xlu0 %v437_v13, %s1116_s25 }
 0x9d4   :  { %v440_v15 = vpop.permute.xlu0 %439 }
 0x9d5   :  { %v442_v16 = vadd.f32 %v440_v15, %v432_v14 }
 0x9d7   :  { %1080 = vtanh.f32 %v442_v16 }
 0x9e4   :  { %v1081_v17 = vpop.eup %1080 }
 0x9e5   :  { %445 = vrot.lane.b32.xlu1 %v1081_v17, %s1116_s25 }
 0xa57   :  { %v446_v18 = vpop.permute.xlu1 %445 }
 0xa58   :  { %v448_v19 = vmul.f32 %v1079_v11, %v446_v18  ;;  %v914_v11 = vld [vmem:[%s1380_s0 + $0xe] sm:$0x3] }
 0xa5a   :  { %450 = vrot.lane.b32.xlu0 %v448_v19, %s1117_s3 }
 0xacc   :  { %v451_v20 = vpop.permute.xlu0 %450 }
 0xacd   :  { %897 = vst.msk [vmem:[%s1382_s4 + $0x6] sm:$0x3] %vm131_vm2, %v451_v20  ;;  %1011 = vmatmul.mubr.msk.f32.vlgmr.msra.gmra.mxu0 %vm24_vm1, %v451_v20 }
 0xace   :  { %898 = vst.msk [vmem:[%s1382_s4 + $0x8] sm:$0x3] %vm134_vm3, %v451_v20  ;;  %1025 = vmatpush3.msra.mxu0 %v1147_v1  ;;  %1032 = vmatprep.mubr.msk.f32.mxu0 %vm1115_vm0, %v1114_v0 }
 0xacf   :  { %1026 = vmatprep.subr.mxu0 %v1114_v0 }
 0xad0   :  { %1027 = vmatpush3.msra.mxu0 %v1152_v2 }
 0xad1   :  { %1028 = vmatprep.subr.mxu0 %v1114_v0 }
 0xad2   :  { %1029 = vmatpush3.msra.mxu0 %v1162_v3 }
 0xad3   :  { %1030 = vmatprep.subr.mxu0 %v1114_v0 }
 0xad4   :  { %1031 = vmatpush3.msra.mxu0 %v1171_v4 }
 0xb8d   :  { %v527_v22 = vpop.f32.mrf.mxu0 }
 0xb8e   :  { %v531_v23 = vadd.f32 %v899_v21, %v527_v22 }
 0xb8f   :  { %v1012_v24 = vpop.f32.mrf.mxu0 }
 0xb90   :  { %1082 = vtanh.f32 %v531_v23  ;;  %v901_v26 = vmul.f32 -1.442695, %v531_v23 }
 0xb92   :  { %1084 = vpow2.f32 %v901_v26 }
 0xb9d   :  { %v1083_v25 = vpop.eup %1082 }
 0xb9e   :  { %541 = vrot.lane.b32.xlu1 %v1083_v25, %s1116_s25 }
 0xb9f   :  { %v1085_v27 = vpop.eup %1084 }
 0xba0   :  { %v535_v28 = vadd.f32 1.0, %v1085_v27 }
 0xba2   :  { %1086 = vrcp.f32 %v535_v28 }
 0xbaf   :  { %v1087_v29 = vpop.eup %1086 }
 0xbb0   :  { %v539_v32 = vmul.f32 %v1087_v29, %v442_v16 }
 0xc10   :  { %v542_v30 = vpop.permute.xlu1 %541 }
 0xc11   :  { %v544_v31 = vmul.f32 %v1087_v29, %v542_v30 }
 0xc13   :  { %546 = vrot.lane.b32.xlu0 %v544_v31, %s1116_s25 }
 0xc85   :  { %v547_v33 = vpop.permute.xlu0 %546 }
 0xc86   :  { %v549_v34 = vadd.f32 %v547_v33, %v539_v32 }
 0xc88   :  { %1088 = vtanh.f32 %v549_v34 }
 0xc95   :  { %v1089_v35 = vpop.eup %1088 }
 0xc96   :  { %552 = vrot.lane.b32.xlu1 %v1089_v35, %s1116_s25 }
 0xd08   :  { %v553_v36 = vpop.permute.xlu1 %552 }
 0xd09   :  { %v555_v37 = vmul.f32 %v1087_v29, %v553_v36 }
 0xd0b   :  { %557 = vrot.lane.b32.xlu0 %v555_v37, %s1117_s3 }
 0xd7d   :  { %v558_v38 = vpop.permute.xlu0 %557 }
 0xd7e   :  { %902 = vst.msk [vmem:[%s1382_s4 + $0x8] sm:$0x3] %vm131_vm2, %v558_v38  ;;  %1022 = vmatmul.mubr.msk.f32.vlgmr.msra.gmra.mxu1 %vm24_vm1, %v558_v38 }
 0xd7f   :  { %903 = vst.msk [vmem:[%s1382_s4 + $0x6] sm:$0x3] %vm134_vm3, %v558_v38  ;;  %1036 = vmatpush3.msra.mxu1 %v1147_v1  ;;  %1043 = vmatprep.mubr.msk.f32.mxu1 %vm1115_vm0, %v1114_v0 }
 0xd80   :  { %1037 = vmatprep.subr.mxu1 %v1114_v0 }
 0xd81   :  { %1038 = vmatpush3.msra.mxu1 %v1152_v2 }
 0xd82   :  { %1039 = vmatprep.subr.mxu1 %v1114_v0 }
 0xd83   :  { %1040 = vmatpush3.msra.mxu1 %v1162_v3 }
 0xd84   :  { %1041 = vmatprep.subr.mxu1 %v1114_v0 }
 0xd85   :  { %1042 = vmatpush3.msra.mxu1 %v1171_v4 }
 0xe3e   :  { %v632_v1 = vpop.f32.mrf.mxu1 }
 0xe3f   :  { %v636_v40 = vadd.f32 %v904_v39, %v632_v1 }
 0xe40   :  { %v1023_v41 = vpop.f32.mrf.mxu1 }
 0xe41   :  { %1090 = vtanh.f32 %v636_v40  ;;  %v906_v2 = vmul.f32 -1.442695, %v636_v40 }
 0xe43   :  { %1092 = vpow2.f32 %v906_v2 }
 0xe4e   :  { %v1091_v42 = vpop.eup %1090 }
 0xe4f   :  { %646 = vrot.lane.b32.xlu1 %v1091_v42, %s1116_s25 }
 0xe50   :  { %v1093_v43 = vpop.eup %1092 }
 0xe51   :  { %v640_v44 = vadd.f32 1.0, %v1093_v43 }
 0xe53   :  { %1094 = vrcp.f32 %v640_v44 }
 0xe60   :  { %v1095_v3 = vpop.eup %1094 }
 0xe61   :  { %v644_v4 = vmul.f32 %v1095_v3, %v549_v34 }
 0xec1   :  { %v647_v0 = vpop.permute.xlu1 %646 }
 0xec2   :  { %v649_v45 = vmul.f32 %v1095_v3, %v647_v0 }
 0xec4   :  { %651 = vrot.lane.b32.xlu0 %v649_v45, %s1116_s25 }
 0xf36   :  { %v652_v46 = vpop.permute.xlu0 %651 }
 0xf37   :  { %v654_v47 = vadd.f32 %v652_v46, %v644_v4 }
 0xf39   :  { %1096 = vtanh.f32 %v654_v47 }
 0xf46   :  { %v1097_v48 = vpop.eup %1096 }
 0xf47   :  { %657 = vrot.lane.b32.xlu1 %v1097_v48, %s1116_s25 }
 0xfb9   :  { %v658_v49 = vpop.permute.xlu1 %657 }
 0xfba   :  { %v660_v50 = vmul.f32 %v1095_v3, %v658_v49 }
 0xfbc   :  { %662 = vrot.lane.b32.xlu0 %v660_v50, %s1117_s3 }
0x102e   :  { %v663_v51 = vpop.permute.xlu0 %662 }
0x102f   :  { %907 = vst.msk [vmem:[%s1382_s4 + $0xa] sm:$0x3] %vm131_vm2, %v663_v51  ;;  %1033 = vmatmul.mubr.msk.f32.vlgmr.msra.gmra.mxu0 %vm24_vm1, %v663_v51 }
0x1030   :  { %908 = vst.msk [vmem:[%s1382_s4 + $0x4] sm:$0x3] %vm134_vm3, %v663_v51 }
0x10ef   :  { %v737_v53 = vpop.f32.mrf.mxu0 }
0x10f0   :  { %v741_v54 = vadd.f32 %v909_v52, %v737_v53 }
0x10f1   :  { %v1034_v55 = vpop.f32.mrf.mxu0 }
0x10f2   :  { %1098 = vtanh.f32 %v741_v54  ;;  %v911_v57 = vmul.f32 -1.442695, %v741_v54 }
0x10f4   :  { %1100 = vpow2.f32 %v911_v57 }
0x10ff   :  { %v1099_v56 = vpop.eup %1098 }
0x1100   :  { %751 = vrot.lane.b32.xlu1 %v1099_v56, %s1116_s25 }
0x1101   :  { %v1101_v58 = vpop.eup %1100 }
0x1102   :  { %v745_v59 = vadd.f32 1.0, %v1101_v58 }
0x1104   :  { %1102 = vrcp.f32 %v745_v59 }
0x1111   :  { %v1103_v60 = vpop.eup %1102 }
0x1112   :  { %v749_v63 = vmul.f32 %v1103_v60, %v654_v47 }
0x1172   :  { %v752_v61 = vpop.permute.xlu1 %751 }
0x1173   :  { %v754_v62 = vmul.f32 %v1103_v60, %v752_v61 }
0x1175   :  { %756 = vrot.lane.b32.xlu0 %v754_v62, %s1116_s25 }
0x11e7   :  { %v757_v5 = vpop.permute.xlu0 %756 }
0x11e8   :  { %v759_v6 = vadd.f32 %v757_v5, %v749_v63 }
0x11ea   :  { %1104 = vtanh.f32 %v759_v6 }
0x11f7   :  { %v1105_v7 = vpop.eup %1104 }
0x11f8   :  { %762 = vrot.lane.b32.xlu1 %v1105_v7, %s1116_s25 }
0x126a   :  { %v763_v8 = vpop.permute.xlu1 %762 }
0x126b   :  { %v765_v9 = vmul.f32 %v1103_v60, %v763_v8 }
0x126d   :  { %767 = vrot.lane.b32.xlu0 %v765_v9, %s1117_s3 }
0x12df   :  { %v768_v10 = vpop.permute.xlu0 %767 }
0x12e0   :  { %912 = vst.msk [vmem:[%s1382_s4 + $0xc] sm:$0x3] %vm131_vm2, %v768_v10  ;;  %1044 = vmatmul.mubr.msk.f32.vlgmr.msra.gmra.mxu1 %vm24_vm1, %v768_v10 }
0x12e1   :  { %913 = vst.msk [vmem:[%s1382_s4 + $0x2] sm:$0x3] %vm134_vm3, %v768_v10 }
0x13a0   :  { %v842_v12 = vpop.f32.mrf.mxu1 }
0x13a1   :  { %v846_v13 = vadd.f32 %v914_v11, %v842_v12 }
0x13a2   :  { %v1045_v14 = vpop.f32.mrf.mxu1 }
0x13a3   :  { %1106 = vtanh.f32 %v846_v13  ;;  %v916_v16 = vmul.f32 -1.442695, %v846_v13 }
0x13a5   :  { %1108 = vpow2.f32 %v916_v16 }
0x13b0   :  { %v1107_v15 = vpop.eup %1106 }
0x13b1   :  { %856 = vrot.lane.b32.xlu1 %v1107_v15, %s1116_s25 }
0x13b2   :  { %v1109_v17 = vpop.eup %1108 }
0x13b3   :  { %v850_v18 = vadd.f32 1.0, %v1109_v17 }
0x13b5   :  { %1110 = vrcp.f32 %v850_v18 }
0x13c2   :  { %v1111_v19 = vpop.eup %1110 }
0x13c3   :  { %v854_v22 = vmul.f32 %v1111_v19, %v759_v6 }
0x1423   :  { %v857_v20 = vpop.permute.xlu1 %856 }
0x1424   :  { %v859_v21 = vmul.f32 %v1111_v19, %v857_v20 }
0x1426   :  { %861 = vrot.lane.b32.xlu0 %v859_v21, %s1116_s25 }
0x1498   :  { %v862_v23 = vpop.permute.xlu0 %861 }
0x1499   :  { %v864_v24 = vadd.f32 %v862_v23, %v854_v22 }
0x149b   :  { %1112 = vtanh.f32 %v864_v24 }
0x14a8   :  { %v1113_v25 = vpop.eup %1112 }
0x14a9   :  { %867 = vrot.lane.b32.xlu1 %v1113_v25, %s1116_s25 }
0x151b   :  { %v868_v26 = vpop.permute.xlu1 %867 }
0x151c   :  { %v870_v27 = vmul.f32 %v1111_v19, %v868_v26 }
0x151e   :  { %872 = vrot.lane.b32.xlu0 %v870_v27, %s1117_s3 }
0x1590   :  { %v873_v28 = vpop.permute.xlu0 %872 }
0x1591   :  { %917 = vst.msk [vmem:[%s1382_s4 + $0xe] sm:$0x3] %vm131_vm2, %v873_v28 }
0x1592   :  { %876 = vst.msk [vmem:[%s1382_s4] sm:$0x3] %vm134_vm3, %v873_v28 }

// kernel: bilstm_module_forward.3
= control target key start
LH: loop header
LB: loop body
LE: loop exit
PB: predicated region body
PF: predicated region fallthrough
CT: control target
= control target key end

     0   :  { %v1108_v3 = vmov 0.0   ;;  %vm36_vm0 = vcmask 523264   ;;  %v1109_v18 = vmov 1983009808   ;;  %v117_v20 = vlaneseq  ;;  %s1110_s23 = smov 64   ;;  %s1489_s1 = inlined_call_operand.vmem [shape: f32[64,256], index: 1, kind: input, shape index: {}]   ;;  %s1490_s2 = inlined_call_operand.vmem [shape: f32[2,64], index: 2, kind: input, shape index: {}]   ;;  %s1491_s0 = inlined_call_operand.vmem [shape: f32[8,2,256], index: 0, kind: input, shape index: {}]   ;;  %s1492_s3 = inlined_call_operand.vmem [shape: f32[2,64], index: 3, kind: input, shape index: {}]   ;;  %s1493_s4 = inlined_call_operand.vmem [shape: f32[8,2,64], index: 4, kind: output, shape index: {}]  }
   0x1   :  { %v1139_v0 = vld [vmem:[%s1489_s1 + $0x78] sm:$0xff]  ;;  %v1144_v1 = vld [vmem:[%s1489_s1 + $0x70] sm:$0xff]  ;;  %v1149_v2 = vld [vmem:[%s1489_s1 + $0x68] sm:$0xff]  ;;  %104 = vmatprep.mubr.f32.mxu0 %v1108_v3  ;;  %236 = vmatprep.mubr.f32.mxu1 %v1108_v3  ;;  %v115_v19 = vunpack.c.l.s4 %v1109_v18  ;;  %vm162_vm1 = vcmask 254976   ;;  %vm165_vm2 = vcmask 517376  }
   0x2   :  { %56 = vmatprep.subr.mxu0 %v1139_v0  ;;  %v1157_v4 = vld [vmem:[%s1489_s1 + $0x60] sm:$0xff]  ;;  %188 = vmatprep.subr.mxu1 %v1139_v0  ;;  %v1164_v5 = vld [vmem:[%s1489_s1 + $0x58] sm:$0xff]  ;;  %v1171_v6 = vld [vmem:[%s1489_s1 + $0x50] sm:$0xff]  ;;  %v118_v22 = vshrl.u32 %v117_v20, 7 }
   0x3   :  { %57 = vmatpush1.msra.mxu0 %v1144_v1  ;;  %189 = vmatpush1.msra.mxu1 %v1144_v1  ;;  %v1178_v7 = vld [vmem:[%s1489_s1 + $0x48] sm:$0xff]  ;;  %v1185_v8 = vld [vmem:[%s1489_s1 + $0x40] sm:$0xff]  ;;  %v1192_v9 = vld [vmem:[%s1489_s1 + $0x38] sm:$0xff]  ;;  %v116_v21 = vunpack.c.0.s8 %v115_v19 }
   0x4   :  { %58 = vmatprep.subr.mxu0 %v1149_v2  ;;  %190 = vmatprep.subr.mxu1 %v1149_v2  ;;  %v1199_v10 = vld [vmem:[%s1489_s1 + $0x30] sm:$0xff]  ;;  %v1206_v11 = vld [vmem:[%s1489_s1 + $0x28] sm:$0xff]  ;;  %v1213_v12 = vld [vmem:[%s1489_s1 + $0x20] sm:$0xff] }
   0x5   :  { %59 = vmatpush1.msra.mxu0 %v1157_v4  ;;  %191 = vmatpush1.msra.mxu1 %v1157_v4  ;;  %v1220_v13 = vld [vmem:[%s1489_s1 + $0x18] sm:$0xff]  ;;  %v1227_v14 = vld [vmem:[%s1489_s1 + $0x10] sm:$0xff]  ;;  %v1234_v15 = vld [vmem:[%s1489_s1 + $0x8] sm:$0xff]  ;;  %v1273_v24 = vsub.s32 %v116_v21, %v118_v22 }
   0x6   :  { %60 = vmatprep.subr.mxu0 %v1164_v5  ;;  %192 = vmatprep.subr.mxu1 %v1164_v5  ;;  %v1241_v16 = vld [vmem:[%s1489_s1] sm:$0xff] }
   0x7   :  { %61 = vmatpush1.msra.mxu0 %v1171_v6  ;;  %193 = vmatpush1.msra.mxu1 %v1171_v6  ;;  %v33_v17 = vld [vmem:[%s1490_s2] sm:$0x3]  ;;  %v1007_v50 = vld [vmem:[%s1491_s0 + $0x4] sm:$0xf] }
   0x8   :  { %62 = vmatprep.subr.mxu0 %v1178_v7  ;;  %194 = vmatprep.subr.mxu1 %v1178_v7  ;;  %v35_v27 = vld [vmem:[%s1491_s0] sm:$0xf] }
   0x9   :  { %63 = vmatpush1.msra.mxu0 %v1185_v8  ;;  %195 = vmatpush1.msra.mxu1 %v1185_v8  ;;  %v1005_v30 = vld.sshfl [vmem:[%s1492_s3] sm:$0x3 pattern:$0x76325410] }
   0xa   :  { %64 = vmatprep.subr.mxu0 %v1192_v9  ;;  %196 = vmatprep.subr.mxu1 %v1192_v9 }
   0xb   :  { %65 = vmatpush1.msra.mxu0 %v1199_v10  ;;  %197 = vmatpush1.msra.mxu1 %v1199_v10 }
   0xc   :  { %66 = vmatprep.subr.mxu0 %v1206_v11  ;;  %198 = vmatprep.subr.mxu1 %v1206_v11 }
   0xd   :  { %67 = vmatpush1.msra.mxu0 %v1213_v12  ;;  %199 = vmatpush1.msra.mxu1 %v1213_v12 }
   0xe   :  { %68 = vmatprep.subr.mxu0 %v1220_v13  ;;  %200 = vmatprep.subr.mxu1 %v1220_v13 }
   0xf   :  { %69 = vmatpush1.msra.mxu0 %v1227_v14  ;;  %201 = vmatpush1.msra.mxu1 %v1227_v14 }
  0x10   :  { %70 = vmatprep.subr.mxu0 %v1234_v15  ;;  %202 = vmatprep.subr.mxu1 %v1234_v15 }
  0x11   :  { %71 = vmatpush1.msra.mxu0 %v1241_v16  ;;  %203 = vmatpush1.msra.mxu1 %v1241_v16 }
  0x12   :  { %1003 = vmatmul.mubr.msk.f32.vlgmr.msra.gmra.mxu0 %vm36_vm0, %v33_v17  ;;  %308 = vmatprep.subr.mxu0 %v1139_v0 }
  0x13   :  { %309 = vmatpush1.msra.mxu0 %v1144_v1  ;;  %356 = vmatprep.mubr.f32.mxu0 %v1108_v3 }
  0x14   :  { %310 = vmatprep.subr.mxu0 %v1149_v2  ;;  %428 = vmatprep.subr.mxu1 %v1139_v0 }
  0x15   :  { %311 = vmatpush1.msra.mxu0 %v1157_v4 }
  0x16   :  { %312 = vmatprep.subr.mxu0 %v1164_v5 }
  0x17   :  { %313 = vmatpush1.msra.mxu0 %v1171_v6 }
  0x18   :  { %314 = vmatprep.subr.mxu0 %v1178_v7 }
  0x19   :  { %315 = vmatpush1.msra.mxu0 %v1185_v8 }
  0x1a   :  { %316 = vmatprep.subr.mxu0 %v1192_v9 }
  0x1b   :  { %317 = vmatpush1.msra.mxu0 %v1199_v10 }
  0x1c   :  { %318 = vmatprep.subr.mxu0 %v1206_v11 }
  0x1d   :  { %319 = vmatpush1.msra.mxu0 %v1213_v12 }
  0x1e   :  { %320 = vmatprep.subr.mxu0 %v1220_v13 }
  0x1f   :  { %321 = vmatpush1.msra.mxu0 %v1227_v14 }
  0x20   :  { %322 = vmatprep.subr.mxu0 %v1234_v15 }
  0x21   :  { %323 = vmatpush1.msra.mxu0 %v1241_v16 }
  0x22   :  { %548 = vmatprep.subr.mxu0 %v1139_v0 }
  0xd2   :  { %v106_v23 = vpop.f32.mrf.mxu0 }
  0xd4   :  { %v108_v25 = vpop.f32.mrf.mxu0 }
  0xd5   :  { %v113_v26 = vcombine.low %v106_v23, %v108_v25  ;;  %v1012_v25 = vld [vmem:[%s1491_s0 + $0x8] sm:$0xf] }
  0xd7   :  { %v120_v28 = vrot.slane %v113_v26, %v1273_v24 }
  0xd9   :  { %v122_v29 = vadd.f32 %v120_v28, %v35_v27 }
  0xdb   :  { %130 = vrot.lane.b32.xlu0 %v122_v29, %s1110_s23  ;;  %v1004_v31 = vmul.f32 -1.442695, %v122_v29 }
  0xdd   :  { %1044 = vpow2.f32 %v1004_v31 }
  0xdf   :  { %143 = vrot.lane.b32.xlu0 %v1005_v30, %s1110_s23 }
  0xea   :  { %v1045_v32 = vpop.eup %1044 }
  0xeb   :  { %v126_v33 = vadd.f32 1.0, %v1045_v32 }
  0xed   :  { %1046 = vrcp.f32 %v126_v33 }
  0xfa   :  { %v1047_v36 = vpop.eup %1046 }
  0xfb   :  { %v155_v44 = vrot.slane %v1047_v36, 2 }
 0x14d   :  { %v131_v34 = vpop.permute.xlu0 %130 }
 0x14e   :  { %v132_v35 = vrot.slane %v131_v34, 2 }
 0x150   :  { %1048 = vtanh.f32 %v132_v35 }
 0x151   :  { %v144_v39 = vpop.permute.xlu0 %143 }
 0x152   :  { %v146_v40 = vmul.f32 %v1047_v36, %v144_v39 }
 0x15d   :  { %v1049_v37 = vpop.eup %1048 }
 0x15e   :  { %v147_v38 = vmul.f32 %v1049_v37, %v1047_v36 }
 0x160   :  { %149 = vrot.lane.b32.xlu1 %v147_v38, %s1110_s23 }
 0x1d2   :  { %v150_v41 = vpop.permute.xlu1 %149 }
 0x1d3   :  { %v152_v42 = vadd.f32 %v150_v41, %v146_v40 }
 0x1d5   :  { %1050 = vtanh.f32 %v152_v42 }
 0x1e2   :  { %v1051_v43 = vpop.eup %1050 }
 0x1e3   :  { %158 = vrot.lane.b32.xlu1 %v1051_v43, %s1110_s23 }
 0x255   :  { %v159_v45 = vpop.permute.xlu1 %158 }
 0x256   :  { %v161_v46 = vmul.f32 %v159_v45, %v155_v44 }
 0x258   :  { %163 = vst.msk [vmem:[%s1493_s4] sm:$0x3] %vm162_vm1, %v161_v46  ;;  %1008 = vmatmul.mubr.msk.f32.vlgmr.msra.gmra.mxu1 %vm36_vm0, %v161_v46 }
 0x259   :  { %1006 = vst.msk [vmem:[%s1493_s4 + $0xe] sm:$0x3] %vm165_vm2, %v161_v46  ;;  %429 = vmatpush1.msra.mxu1 %v1144_v1  ;;  %476 = vmatprep.mubr.f32.mxu1 %v1108_v3  ;;  %v1017_v46 = vld [vmem:[%s1491_s0 + $0xc] sm:$0xf] }
 0x25a   :  { %430 = vmatprep.subr.mxu1 %v1149_v2 }
 0x25b   :  { %431 = vmatpush1.msra.mxu1 %v1157_v4 }
 0x25c   :  { %432 = vmatprep.subr.mxu1 %v1164_v5 }
 0x25d   :  { %433 = vmatpush1.msra.mxu1 %v1171_v6 }
 0x25e   :  { %434 = vmatprep.subr.mxu1 %v1178_v7 }
 0x25f   :  { %435 = vmatpush1.msra.mxu1 %v1185_v8 }
 0x260   :  { %436 = vmatprep.subr.mxu1 %v1192_v9 }
 0x261   :  { %437 = vmatpush1.msra.mxu1 %v1199_v10 }
 0x262   :  { %438 = vmatprep.subr.mxu1 %v1206_v11 }
 0x263   :  { %439 = vmatpush1.msra.mxu1 %v1213_v12 }
 0x264   :  { %440 = vmatprep.subr.mxu1 %v1220_v13 }
 0x265   :  { %441 = vmatpush1.msra.mxu1 %v1227_v14 }
 0x266   :  { %442 = vmatprep.subr.mxu1 %v1234_v15 }
 0x267   :  { %443 = vmatpush1.msra.mxu1 %v1241_v16 }
 0x268   :  { %666 = vmatprep.subr.mxu1 %v1139_v0 }
 0x318   :  { %v238_v47 = vpop.f32.mrf.mxu1 }
 0x31a   :  { %v240_v48 = vpop.f32.mrf.mxu1 }
 0x31b   :  { %v245_v49 = vcombine.low %v238_v47, %v240_v48 }
 0x31d   :  { %v252_v51 = vrot.slane %v245_v49, %v1273_v24 }
 0x31f   :  { %v254_v52 = vadd.f32 %v1007_v50, %v252_v51 }
 0x321   :  { %262 = vrot.lane.b32.xlu0 %v254_v52, %s1110_s23  ;;  %v1009_v53 = vmul.f32 -1.442695, %v254_v52 }
 0x323   :  { %1052 = vpow2.f32 %v1009_v53 }
 0x330   :  { %v1053_v54 = vpop.eup %1052 }
 0x331   :  { %v258_v55 = vadd.f32 1.0, %v1053_v54 }
 0x333   :  { %1054 = vrcp.f32 %v258_v55 }
 0x340   :  { %v1055_v58 = vpop.eup %1054 }
 0x341   :  { %v267_v61 = vmul.f32 %v1055_v58, %v152_v42  ;;  %v276_v18 = vrot.slane %v1055_v58, 2 }
 0x393   :  { %v263_v56 = vpop.permute.xlu0 %262 }
 0x394   :  { %v264_v57 = vrot.slane %v263_v56, 2 }
 0x396   :  { %1056 = vtanh.f32 %v264_v57 }
 0x3a3   :  { %v1057_v59 = vpop.eup %1056 }
 0x3a4   :  { %v268_v60 = vmul.f32 %v1057_v59, %v1055_v58 }
 0x3a6   :  { %270 = vrot.lane.b32.xlu1 %v268_v60, %s1110_s23 }
 0x418   :  { %v271_v62 = vpop.permute.xlu1 %270 }
 0x419   :  { %v273_v63 = vadd.f32 %v271_v62, %v267_v61 }
 0x41b   :  { %1058 = vtanh.f32 %v273_v63 }
 0x428   :  { %v1059_v17 = vpop.eup %1058 }
 0x429   :  { %279 = vrot.lane.b32.xlu0 %v1059_v17, %s1110_s23 }
 0x49b   :  { %v280_v19 = vpop.permute.xlu0 %279 }
 0x49c   :  { %v282_v20 = vmul.f32 %v280_v19, %v276_v18  ;;  %v1022_v19 = vld [vmem:[%s1491_s0 + $0x10] sm:$0xf] }
 0x49e   :  { %1010 = vst.msk [vmem:[%s1493_s4 + $0x2] sm:$0x3] %vm162_vm1, %v282_v20  ;;  %1013 = vmatmul.mubr.msk.f32.vlgmr.msra.gmra.mxu0 %vm36_vm0, %v282_v20 }
 0x49f   :  { %1011 = vst.msk [vmem:[%s1493_s4 + $0xc] sm:$0x3] %vm165_vm2, %v282_v20  ;;  %549 = vmatpush1.msra.mxu0 %v1144_v1  ;;  %596 = vmatprep.mubr.f32.mxu0 %v1108_v3 }
 0x4a0   :  { %550 = vmatprep.subr.mxu0 %v1149_v2 }
 0x4a1   :  { %551 = vmatpush1.msra.mxu0 %v1157_v4 }
 0x4a2   :  { %552 = vmatprep.subr.mxu0 %v1164_v5 }
 0x4a3   :  { %553 = vmatpush1.msra.mxu0 %v1171_v6 }
 0x4a4   :  { %554 = vmatprep.subr.mxu0 %v1178_v7 }
 0x4a5   :  { %555 = vmatpush1.msra.mxu0 %v1185_v8 }
 0x4a6   :  { %556 = vmatprep.subr.mxu0 %v1192_v9 }
 0x4a7   :  { %557 = vmatpush1.msra.mxu0 %v1199_v10 }
 0x4a8   :  { %558 = vmatprep.subr.mxu0 %v1206_v11 }
 0x4a9   :  { %559 = vmatpush1.msra.mxu0 %v1213_v12 }
 0x4aa   :  { %560 = vmatprep.subr.mxu0 %v1220_v13 }
 0x4ab   :  { %561 = vmatpush1.msra.mxu0 %v1227_v14 }
 0x4ac   :  { %562 = vmatprep.subr.mxu0 %v1234_v15 }
 0x4ad   :  { %563 = vmatpush1.msra.mxu0 %v1241_v16 }
 0x4ae   :  { %784 = vmatprep.subr.mxu0 %v1139_v0 }
 0x55e   :  { %v358_v21 = vpop.f32.mrf.mxu0 }
 0x560   :  { %v360_v22 = vpop.f32.mrf.mxu0 }
 0x561   :  { %v365_v23 = vcombine.low %v358_v21, %v360_v22 }
 0x563   :  { %v372_v26 = vrot.slane %v365_v23, %v1273_v24 }
 0x565   :  { %v374_v27 = vadd.f32 %v1012_v25, %v372_v26 }
 0x567   :  { %382 = vrot.lane.b32.xlu1 %v374_v27, %s1110_s23  ;;  %v1014_v28 = vmul.f32 -1.442695, %v374_v27 }
 0x569   :  { %1060 = vpow2.f32 %v1014_v28 }
 0x576   :  { %v1061_v29 = vpop.eup %1060 }
 0x577   :  { %v378_v30 = vadd.f32 1.0, %v1061_v29 }
 0x579   :  { %1062 = vrcp.f32 %v378_v30 }
 0x586   :  { %v1063_v33 = vpop.eup %1062 }
 0x587   :  { %v387_v36 = vmul.f32 %v1063_v33, %v273_v63  ;;  %v396_v40 = vrot.slane %v1063_v33, 2 }
 0x5d9   :  { %v383_v31 = vpop.permute.xlu1 %382 }
 0x5da   :  { %v384_v32 = vrot.slane %v383_v31, 2 }
 0x5dc   :  { %1064 = vtanh.f32 %v384_v32 }
 0x5e9   :  { %v1065_v34 = vpop.eup %1064 }
 0x5ea   :  { %v388_v35 = vmul.f32 %v1065_v34, %v1063_v33 }
 0x5ec   :  { %390 = vrot.lane.b32.xlu0 %v388_v35, %s1110_s23 }
 0x65e   :  { %v391_v37 = vpop.permute.xlu0 %390 }
 0x65f   :  { %v393_v38 = vadd.f32 %v391_v37, %v387_v36 }
 0x661   :  { %1066 = vtanh.f32 %v393_v38 }
 0x66e   :  { %v1067_v39 = vpop.eup %1066 }
 0x66f   :  { %399 = vrot.lane.b32.xlu1 %v1067_v39, %s1110_s23 }
 0x6e1   :  { %v400_v41 = vpop.permute.xlu1 %399 }
 0x6e2   :  { %v402_v42 = vmul.f32 %v400_v41, %v396_v40 }
 0x6e4   :  { %1015 = vst.msk [vmem:[%s1493_s4 + $0x4] sm:$0x3] %vm162_vm1, %v402_v42  ;;  %1018 = vmatmul.mubr.msk.f32.vlgmr.msra.gmra.mxu1 %vm36_vm0, %v402_v42 }
 0x6e5   :  { %1016 = vst.msk [vmem:[%s1493_s4 + $0xa] sm:$0x3] %vm165_vm2, %v402_v42  ;;  %667 = vmatpush1.msra.mxu1 %v1144_v1  ;;  %714 = vmatprep.mubr.f32.mxu1 %v1108_v3 }
 0x6e6   :  { %668 = vmatprep.subr.mxu1 %v1149_v2 }
 0x6e7   :  { %669 = vmatpush1.msra.mxu1 %v1157_v4 }
 0x6e8   :  { %670 = vmatprep.subr.mxu1 %v1164_v5 }
 0x6e9   :  { %671 = vmatpush1.msra.mxu1 %v1171_v6 }
 0x6ea   :  { %672 = vmatprep.subr.mxu1 %v1178_v7 }
 0x6eb   :  { %673 = vmatpush1.msra.mxu1 %v1185_v8 }
 0x6ec   :  { %674 = vmatprep.subr.mxu1 %v1192_v9 }
 0x6ed   :  { %675 = vmatpush1.msra.mxu1 %v1199_v10 }
 0x6ee   :  { %676 = vmatprep.subr.mxu1 %v1206_v11 }
 0x6ef   :  { %677 = vmatpush1.msra.mxu1 %v1213_v12 }
 0x6f0   :  { %678 = vmatprep.subr.mxu1 %v1220_v13 }
 0x6f1   :  { %679 = vmatpush1.msra.mxu1 %v1227_v14 }
 0x6f2   :  { %680 = vmatprep.subr.mxu1 %v1234_v15 }
 0x6f3   :  { %681 = vmatpush1.msra.mxu1 %v1241_v16 }
 0x6f4   :  { %902 = vmatprep.subr.mxu1 %v1139_v0 }
 0x7a4   :  { %v478_v43 = vpop.f32.mrf.mxu1 }
 0x7a6   :  { %v480_v44 = vpop.f32.mrf.mxu1 }
 0x7a7   :  { %v485_v45 = vcombine.low %v478_v43, %v480_v44 }
 0x7a9   :  { %v492_v47 = vrot.slane %v485_v45, %v1273_v24 }
 0x7ab   :  { %v494_v48 = vadd.f32 %v1017_v46, %v492_v47  ;;  %v1032_v46 = vld [vmem:[%s1491_s0 + $0x18] sm:$0xf] }
 0x7ad   :  { %502 = vrot.lane.b32.xlu0 %v494_v48, %s1110_s23  ;;  %v1019_v49 = vmul.f32 -1.442695, %v494_v48 }
 0x7af   :  { %1068 = vpow2.f32 %v1019_v49 }
 0x7bc   :  { %v1069_v50 = vpop.eup %1068 }
 0x7bd   :  { %v498_v51 = vadd.f32 1.0, %v1069_v50 }
 0x7bf   :  { %1070 = vrcp.f32 %v498_v51 }
 0x7cc   :  { %v1071_v0 = vpop.eup %1070 }
 0x7cd   :  { %v507_v56 = vmul.f32 %v1071_v0, %v393_v38  ;;  %v516_v60 = vrot.slane %v1071_v0, 2 }
 0x81f   :  { %v503_v52 = vpop.permute.xlu0 %502 }
 0x820   :  { %v504_v53 = vrot.slane %v503_v52, 2 }
 0x822   :  { %1072 = vtanh.f32 %v504_v53 }
 0x82f   :  { %v1073_v54 = vpop.eup %1072 }
 0x830   :  { %v508_v55 = vmul.f32 %v1073_v54, %v1071_v0 }
 0x832   :  { %510 = vrot.lane.b32.xlu1 %v508_v55, %s1110_s23 }
 0x8a4   :  { %v511_v57 = vpop.permute.xlu1 %510 }
 0x8a5   :  { %v513_v58 = vadd.f32 %v511_v57, %v507_v56 }
 0x8a7   :  { %1074 = vtanh.f32 %v513_v58 }
 0x8b4   :  { %v1075_v59 = vpop.eup %1074 }
 0x8b5   :  { %519 = vrot.lane.b32.xlu0 %v1075_v59, %s1110_s23 }
 0x927   :  { %v520_v61 = vpop.permute.xlu0 %519 }
 0x928   :  { %v522_v62 = vmul.f32 %v520_v61, %v516_v60 }
 0x92a   :  { %1020 = vst.msk [vmem:[%s1493_s4 + $0x6] sm:$0x3] %vm162_vm1, %v522_v62  ;;  %1023 = vmatmul.mubr.msk.f32.vlgmr.msra.gmra.mxu0 %vm36_vm0, %v522_v62 }
 0x92b   :  { %1021 = vst.msk [vmem:[%s1493_s4 + $0x8] sm:$0x3] %vm165_vm2, %v522_v62  ;;  %785 = vmatpush1.msra.mxu0 %v1144_v1  ;;  %832 = vmatprep.mubr.f32.mxu0 %v1108_v3 }
 0x92c   :  { %786 = vmatprep.subr.mxu0 %v1149_v2 }
 0x92d   :  { %787 = vmatpush1.msra.mxu0 %v1157_v4 }
 0x92e   :  { %788 = vmatprep.subr.mxu0 %v1164_v5 }
 0x92f   :  { %789 = vmatpush1.msra.mxu0 %v1171_v6 }
 0x930   :  { %790 = vmatprep.subr.mxu0 %v1178_v7 }
 0x931   :  { %791 = vmatpush1.msra.mxu0 %v1185_v8 }
 0x932   :  { %792 = vmatprep.subr.mxu0 %v1192_v9 }
 0x933   :  { %793 = vmatpush1.msra.mxu0 %v1199_v10 }
 0x934   :  { %794 = vmatprep.subr.mxu0 %v1206_v11 }
 0x935   :  { %795 = vmatpush1.msra.mxu0 %v1213_v12 }
 0x936   :  { %796 = vmatprep.subr.mxu0 %v1220_v13 }
 0x937   :  { %797 = vmatpush1.msra.mxu0 %v1227_v14 }
 0x938   :  { %798 = vmatprep.subr.mxu0 %v1234_v15 }
 0x939   :  { %799 = vmatpush1.msra.mxu0 %v1241_v16 }
 0x9ea   :  { %v598_v63 = vpop.f32.mrf.mxu0 }
 0x9ec   :  { %v600_v17 = vpop.f32.mrf.mxu0 }
 0x9ed   :  { %v605_v18 = vcombine.low %v598_v63, %v600_v17 }
 0x9ef   :  { %v612_v20 = vrot.slane %v605_v18, %v1273_v24 }
 0x9f1   :  { %v614_v21 = vadd.f32 %v1022_v19, %v612_v20  ;;  %v1037_v19 = vld [vmem:[%s1491_s0 + $0x1c] sm:$0xf] }
 0x9f3   :  { %622 = vrot.lane.b32.xlu1 %v614_v21, %s1110_s23  ;;  %v1024_v22 = vmul.f32 -1.442695, %v614_v21 }
 0x9f5   :  { %1076 = vpow2.f32 %v1024_v22 }
 0xa02   :  { %v1077_v23 = vpop.eup %1076 }
 0xa03   :  { %v618_v25 = vadd.f32 1.0, %v1077_v23 }
 0xa05   :  { %1078 = vrcp.f32 %v618_v25 }
 0xa12   :  { %v1079_v28 = vpop.eup %1078 }
 0xa13   :  { %v627_v31 = vmul.f32 %v1079_v28, %v513_v58  ;;  %v636_v35 = vrot.slane %v1079_v28, 2 }
 0xa65   :  { %v623_v26 = vpop.permute.xlu1 %622 }
 0xa66   :  { %v624_v27 = vrot.slane %v623_v26, 2 }
 0xa68   :  { %1080 = vtanh.f32 %v624_v27 }
 0xa75   :  { %v1081_v29 = vpop.eup %1080 }
 0xa76   :  { %v628_v30 = vmul.f32 %v1081_v29, %v1079_v28 }
 0xa78   :  { %630 = vrot.lane.b32.xlu0 %v628_v30, %s1110_s23 }
 0xaea   :  { %v631_v32 = vpop.permute.xlu0 %630 }
 0xaeb   :  { %v633_v33 = vadd.f32 %v631_v32, %v627_v31 }
 0xaed   :  { %1082 = vtanh.f32 %v633_v33 }
 0xafa   :  { %v1083_v34 = vpop.eup %1082 }
 0xafb   :  { %639 = vrot.lane.b32.xlu1 %v1083_v34, %s1110_s23 }
 0xb6d   :  { %v640_v36 = vpop.permute.xlu1 %639 }
 0xb6e   :  { %v642_v37 = vmul.f32 %v640_v36, %v636_v35 }
 0xb70   :  { %1025 = vst.msk [vmem:[%s1493_s4 + $0x8] sm:$0x3] %vm162_vm1, %v642_v37  ;;  %1028 = vmatmul.mubr.msk.f32.vlgmr.msra.gmra.mxu1 %vm36_vm0, %v642_v37 }
 0xb71   :  { %1026 = vst.msk [vmem:[%s1493_s4 + $0x6] sm:$0x3] %vm165_vm2, %v642_v37  ;;  %903 = vmatpush1.msra.mxu1 %v1144_v1  ;;  %950 = vmatprep.mubr.f32.mxu1 %v1108_v3 }
 0xb72   :  { %904 = vmatprep.subr.mxu1 %v1149_v2 }
 0xb73   :  { %905 = vmatpush1.msra.mxu1 %v1157_v4  ;;  %v1027_v4 = vld [vmem:[%s1491_s0 + $0x14] sm:$0xf] }
 0xb74   :  { %906 = vmatprep.subr.mxu1 %v1164_v5 }
 0xb75   :  { %907 = vmatpush1.msra.mxu1 %v1171_v6 }
 0xb76   :  { %908 = vmatprep.subr.mxu1 %v1178_v7 }
 0xb77   :  { %909 = vmatpush1.msra.mxu1 %v1185_v8 }
 0xb78   :  { %910 = vmatprep.subr.mxu1 %v1192_v9 }
 0xb79   :  { %911 = vmatpush1.msra.mxu1 %v1199_v10 }
 0xb7a   :  { %912 = vmatprep.subr.mxu1 %v1206_v11 }
 0xb7b   :  { %913 = vmatpush1.msra.mxu1 %v1213_v12 }
 0xb7c   :  { %914 = vmatprep.subr.mxu1 %v1220_v13 }
 0xb7d   :  { %915 = vmatpush1.msra.mxu1 %v1227_v14 }
 0xb7e   :  { %916 = vmatprep.subr.mxu1 %v1234_v15 }
 0xb7f   :  { %917 = vmatpush1.msra.mxu1 %v1241_v16 }
 0xc30   :  { %v716_v1 = vpop.f32.mrf.mxu1 }
 0xc32   :  { %v718_v2 = vpop.f32.mrf.mxu1 }
 0xc33   :  { %v723_v3 = vcombine.low %v716_v1, %v718_v2 }
 0xc35   :  { %v730_v5 = vrot.slane %v723_v3, %v1273_v24 }
 0xc37   :  { %v732_v6 = vadd.f32 %v1027_v4, %v730_v5 }
 0xc39   :  { %740 = vrot.lane.b32.xlu0 %v732_v6, %s1110_s23  ;;  %v1029_v7 = vmul.f32 -1.442695, %v732_v6 }
 0xc3b   :  { %1084 = vpow2.f32 %v1029_v7 }
 0xc48   :  { %v1085_v8 = vpop.eup %1084 }
 0xc49   :  { %v736_v9 = vadd.f32 1.0, %v1085_v8 }
 0xc4b   :  { %1086 = vrcp.f32 %v736_v9 }
 0xc58   :  { %v1087_v12 = vpop.eup %1086 }
 0xc59   :  { %v745_v15 = vmul.f32 %v1087_v12, %v633_v33  ;;  %v754_v40 = vrot.slane %v1087_v12, 2 }
 0xcab   :  { %v741_v10 = vpop.permute.xlu0 %740 }
 0xcac   :  { %v742_v11 = vrot.slane %v741_v10, 2 }
 0xcae   :  { %1088 = vtanh.f32 %v742_v11 }
 0xcbb   :  { %v1089_v13 = vpop.eup %1088 }
 0xcbc   :  { %v746_v14 = vmul.f32 %v1089_v13, %v1087_v12 }
 0xcbe   :  { %748 = vrot.lane.b32.xlu1 %v746_v14, %s1110_s23 }
 0xd30   :  { %v749_v16 = vpop.permute.xlu1 %748 }
 0xd31   :  { %v751_v38 = vadd.f32 %v749_v16, %v745_v15 }
 0xd33   :  { %1090 = vtanh.f32 %v751_v38 }
 0xd40   :  { %v1091_v39 = vpop.eup %1090 }
 0xd41   :  { %757 = vrot.lane.b32.xlu0 %v1091_v39, %s1110_s23 }
 0xdb3   :  { %v758_v41 = vpop.permute.xlu0 %757 }
 0xdb4   :  { %v760_v42 = vmul.f32 %v758_v41, %v754_v40 }
 0xdb6   :  { %1030 = vst.msk [vmem:[%s1493_s4 + $0xa] sm:$0x3] %vm162_vm1, %v760_v42  ;;  %1033 = vmatmul.mubr.msk.f32.vlgmr.msra.gmra.mxu0 %vm36_vm0, %v760_v42 }
 0xdb7   :  { %1031 = vst.msk [vmem:[%s1493_s4 + $0x4] sm:$0x3] %vm165_vm2, %v760_v42 }
 0xe76   :  { %v834_v43 = vpop.f32.mrf.mxu0 }
 0xe78   :  { %v836_v44 = vpop.f32.mrf.mxu0 }
 0xe79   :  { %v841_v45 = vcombine.low %v834_v43, %v836_v44 }
 0xe7b   :  { %v848_v47 = vrot.slane %v841_v45, %v1273_v24 }
 0xe7d   :  { %v850_v48 = vadd.f32 %v1032_v46, %v848_v47 }
 0xe7f   :  { %858 = vrot.lane.b32.xlu1 %v850_v48, %s1110_s23  ;;  %v1034_v49 = vmul.f32 -1.442695, %v850_v48 }
 0xe81   :  { %1092 = vpow2.f32 %v1034_v49 }
 0xe8e   :  { %v1093_v50 = vpop.eup %1092 }
 0xe8f   :  { %v854_v51 = vadd.f32 1.0, %v1093_v50 }
 0xe91   :  { %1094 = vrcp.f32 %v854_v51 }
 0xe9e   :  { %v1095_v0 = vpop.eup %1094 }
 0xe9f   :  { %v863_v56 = vmul.f32 %v1095_v0, %v751_v38  ;;  %v872_v60 = vrot.slane %v1095_v0, 2 }
 0xef1   :  { %v859_v52 = vpop.permute.xlu1 %858 }
 0xef2   :  { %v860_v53 = vrot.slane %v859_v52, 2 }
 0xef4   :  { %1096 = vtanh.f32 %v860_v53 }
 0xf01   :  { %v1097_v54 = vpop.eup %1096 }
 0xf02   :  { %v864_v55 = vmul.f32 %v1097_v54, %v1095_v0 }
 0xf04   :  { %866 = vrot.lane.b32.xlu0 %v864_v55, %s1110_s23 }
 0xf76   :  { %v867_v57 = vpop.permute.xlu0 %866 }
 0xf77   :  { %v869_v58 = vadd.f32 %v867_v57, %v863_v56 }
 0xf79   :  { %1098 = vtanh.f32 %v869_v58 }
 0xf86   :  { %v1099_v59 = vpop.eup %1098 }
 0xf87   :  { %875 = vrot.lane.b32.xlu1 %v1099_v59, %s1110_s23 }
 0xff9   :  { %v876_v61 = vpop.permute.xlu1 %875 }
 0xffa   :  { %v878_v62 = vmul.f32 %v876_v61, %v872_v60 }
 0xffc   :  { %1035 = vst.msk [vmem:[%s1493_s4 + $0xc] sm:$0x3] %vm162_vm1, %v878_v62  ;;  %1038 = vmatmul.mubr.msk.f32.vlgmr.msra.gmra.mxu1 %vm36_vm0, %v878_v62 }
 0xffd   :  { %1036 = vst.msk [vmem:[%s1493_s4 + $0x2] sm:$0x3] %vm165_vm2, %v878_v62 }
0x10bc   :  { %v952_v63 = vpop.f32.mrf.mxu1 }
0x10be   :  { %v954_v17 = vpop.f32.mrf.mxu1 }
0x10bf   :  { %v959_v18 = vcombine.low %v952_v63, %v954_v17 }
0x10c1   :  { %v966_v20 = vrot.slane %v959_v18, %v1273_v24 }
0x10c3   :  { %v968_v21 = vadd.f32 %v1037_v19, %v966_v20 }
0x10c5   :  { %976 = vrot.lane.b32.xlu0 %v968_v21, %s1110_s23  ;;  %v1039_v22 = vmul.f32 -1.442695, %v968_v21 }
0x10c7   :  { %1100 = vpow2.f32 %v1039_v22 }
0x10d4   :  { %v1101_v23 = vpop.eup %1100 }
0x10d5   :  { %v972_v25 = vadd.f32 1.0, %v1101_v23 }
0x10d7   :  { %1102 = vrcp.f32 %v972_v25 }
0x10e4   :  { %v1103_v28 = vpop.eup %1102 }
0x10e5   :  { %v981_v31 = vmul.f32 %v1103_v28, %v869_v58  ;;  %v990_v34 = vrot.slane %v1103_v28, 2 }
0x1137   :  { %v977_v26 = vpop.permute.xlu0 %976 }
0x1138   :  { %v978_v27 = vrot.slane %v977_v26, 2 }
0x113a   :  { %1104 = vtanh.f32 %v978_v27 }
0x1147   :  { %v1105_v29 = vpop.eup %1104 }
0x1148   :  { %v982_v30 = vmul.f32 %v1105_v29, %v1103_v28 }
0x114a   :  { %984 = vrot.lane.b32.xlu1 %v982_v30, %s1110_s23 }
0x11bc   :  { %v985_v32 = vpop.permute.xlu1 %984 }
0x11bd   :  { %v987_v33 = vadd.f32 %v985_v32, %v981_v31 }
0x11bf   :  { %1106 = vtanh.f32 %v987_v33 }
0x11cc   :  { %v1107_v24 = vpop.eup %1106 }
0x11cd   :  { %993 = vrot.lane.b32.xlu0 %v1107_v24, %s1110_s23 }
0x123f   :  { %v994_v35 = vpop.permute.xlu0 %993 }
0x1240   :  { %v996_v36 = vmul.f32 %v994_v35, %v990_v34 }
0x1242   :  { %1040 = vst.msk [vmem:[%s1493_s4 + $0xe] sm:$0x3] %vm162_vm1, %v996_v36 }
0x1243   :  { %998 = vst.msk [vmem:[%s1493_s4] sm:$0x3] %vm165_vm2, %v996_v36 }

</bundles_post_ra>
